<compile_context>
chip_gen: v7x
topology: tpu7x:2x2x1
jax: 0.10.0
libtpu: 0.0.40
codegen_flags: <defaults>
</compile_context>

<pallas_src>
import functools

import jax
import jax.numpy as jnp
from jax.experimental import pallas as pl
from jax.experimental.pallas import tpu as pltpu

# ---------------- small synthetic "HateBERT" config ----------------
VOCAB, MAX_POS, TYPES = 100, 64, 2
H, NH, DH, LAYERS, INTER, NUM_LABELS = 32, 2, 16, 2, 64, 2
LABEL_PAD = 128           # lane-dense classifier output; sliced back to NUM_LABELS
LN_EPS = 1e-12
NEG_INF = -1e9


# ---------------- in-kernel helpers ----------------
def _layernorm(x, gamma, beta):
    """LayerNorm over the last axis; statistics kept in f32 (LN_EPS < bf16 eps)."""
    mu = jnp.mean(x, axis=-1, keepdims=True)
    var = jnp.mean(jnp.square(x - mu), axis=-1, keepdims=True)
    return (x - mu) * jax.lax.rsqrt(var + LN_EPS) * gamma + beta


def _mm(a_f32, w_bf16):
    """bf16 MXU matmul (weights stored bf16) with f32 accumulation."""
    return jnp.dot(a_f32.astype(jnp.bfloat16), w_bf16,
                   preferred_element_type=jnp.float32)


# ---------------- the single fused forward kernel ----------------
def _fused_forward_kernel(emb_ref, mask_ref, labels_ref, cw_ref, emb_ln_ref,
                          w_qkv_ref, b_qkv_ref, wo_ref, bo_ref, ln1_ref,
                          wi_ref, bi_ref, wo2_ref, bo2_ref, ln2_ref,
                          wp_ref, bp_ref, wc_ref, bc_ref,
                          logits_ref, loss_ref, ctx_scr, *, batch, seq):
    # Embedding sum arrives pre-flattened as (B*S, H); LayerNorm it in VMEM.
    x = _layernorm(emb_ref[...], emb_ln_ref[0:1, :], emb_ln_ref[1:2, :])

    # ---- encoder layers: static loop over the stacked (LAYERS, ...) weights ----
    for l in range(LAYERS):
        # fused QKV projection; 1/sqrt(DH) already folded into the Q columns
        qkv = _mm(x, w_qkv_ref[l]) + b_qkv_ref[l]           # (B*S, 3H) f32
        q = qkv[:, 0:H]
        k = qkv[:, H:2 * H]
        v = qkv[:, 2 * H:3 * H]

        # per-(batch, head) attention; contexts written directly into VMEM scratch
        # (avoids jnp.concatenate lane shuffles).
        # TODO(synk): at real NH/S switch to a batched dot_general or fori_loop so
        # only one head's (S, S) tiles are live at a time.
        for b in range(batch):
            rs = slice(b * seq, (b + 1) * seq)
            mask_b = mask_ref[b:b + 1, :]                   # (1, S) additive mask
            for hh in range(NH):
                cs = slice(hh * DH, (hh + 1) * DH)
                qh = q[rs, cs].astype(jnp.bfloat16)
                kh = k[rs, cs].astype(jnp.bfloat16)
                vh = v[rs, cs].astype(jnp.bfloat16)
                s = jax.lax.dot_general(qh, kh, (((1,), (1,)), ((), ())),
                                        preferred_element_type=jnp.float32)
                s = s + mask_b
                mx = jnp.max(s, axis=-1, keepdims=True)
                p = jnp.exp(s - mx)
                p = p / jnp.sum(p, axis=-1, keepdims=True)  # exact normalization
                ctx_scr[rs, cs] = jnp.dot(p.astype(jnp.bfloat16), vh,
                                          preferred_element_type=jnp.float32)
        ctx = ctx_scr[...]                                  # (B*S, H)

        # output projection with fused residual + LayerNorm epilogue
        attn_out = _mm(ctx, wo_ref[l]) + bo_ref[l] + x
        ln1 = ln1_ref[l]
        h1 = _layernorm(attn_out, ln1[0:1, :], ln1[1:2, :])

        # FFN with fused gelu and residual + LayerNorm epilogue
        # TODO(synk): HF BERT uses erf-based gelu; tanh approximation used here.
        ff = jax.nn.gelu(_mm(h1, wi_ref[l]) + bi_ref[l], approximate=True)
        ff2 = _mm(ff, wo2_ref[l]) + bo2_ref[l] + h1
        ln2 = ln2_ref[l]
        x = _layernorm(ff2, ln2[0:1, :], ln2[1:2, :])

    # ---- pooler + classifier ([CLS] rows taken from VMEM, no HBM round trip) ----
    cls = jnp.concatenate([x[b * seq:b * seq + 1, :] for b in range(batch)], axis=0)
    pooled = jnp.tanh(_mm(cls, wp_ref[...]) + bp_ref[...])          # (B, H)
    logits = _mm(pooled, wc_ref[...]) + bc_ref[...]                 # (B, 128) lane-dense
    logits_ref[...] = logits

    # ---- weighted cross-entropy (padded columns masked before log-sum-exp) ----
    col = jax.lax.broadcasted_iota(jnp.int32, (batch, LABEL_PAD), 1)
    masked = jnp.where(col < NUM_LABELS, logits, NEG_INF)
    onehot = (col == labels_ref[...]).astype(jnp.float32)           # built in-kernel
    mx = jnp.max(masked, axis=-1, keepdims=True)
    lse = jnp.log(jnp.sum(jnp.exp(masked - mx), axis=-1, keepdims=True)) + mx
    per = -jnp.sum(onehot * (masked - lse), axis=-1, keepdims=True)  # (B, 1)
    sw = jnp.sum(onehot * cw_ref[...], axis=-1, keepdims=True)       # (B, 1)
    num = jnp.sum(per * sw, axis=0, keepdims=True)                   # (1, 1)
    den = jnp.sum(sw, axis=0, keepdims=True)                         # (1, 1)
    # matches torch CrossEntropyLoss(weight=...) 'mean'; guard den==0 (all ignored)
    loss_ref[...] = num / jnp.where(den > 0.0, den, 1.0)


def pallas_fused_forward(emb2d, add_mask, labels2d, cw_pad, params):
    Bv, S = add_mask.shape
    n_tok = Bv * S
    flops = (LAYERS * (2 * n_tok * H * 3 * H                 # QKV
                       + Bv * NH * 2 * (2 * S * S * DH)      # scores + context
                       + 2 * n_tok * H * H                   # output projection
                       + 2 * 2 * n_tok * H * INTER)          # FFN
             + 2 * Bv * H * H + 2 * Bv * H * LABEL_PAD)      # pooler + classifier
    transcendentals = (LAYERS * (Bv * NH * S * S + n_tok * INTER)
                       + Bv * H + Bv * LABEL_PAD)
    bytes_accessed = (emb2d.size * 4 + add_mask.size * 4 + labels2d.size * 4
                      + cw_pad.size * 4
                      + sum(int(v.size) * v.dtype.itemsize
                            for k, v in params.items()
                            if k not in ("word_emb", "pos_emb", "type_emb"))
                      + Bv * LABEL_PAD * 4 + 4)

    kern = functools.partial(_fused_forward_kernel, batch=Bv, seq=S)
    return pl.pallas_call(
        kern,
        out_shape=(jax.ShapeDtypeStruct((Bv, LABEL_PAD), jnp.float32),  # padded logits
                   jax.ShapeDtypeStruct((1, 1), jnp.float32)),          # weighted-CE loss
        scratch_shapes=[pltpu.VMEM((n_tok, H), jnp.float32)],           # per-head ctx slab
        cost_estimate=pl.CostEstimate(flops=flops,
                                      transcendentals=transcendentals,
                                      bytes_accessed=bytes_accessed),
    )(emb2d, add_mask, labels2d, cw_pad,
      params["emb_ln"],
      params["w_qkv"], params["b_qkv"], params["wo"], params["bo"], params["ln1"],
      params["wi"], params["bi"], params["wo2"], params["bo2"], params["ln2"],
      params["wp"], params["bp"], params["wc_pad"], params["bc_pad"])


# ---------------- parameter init (deterministic, synthetic) ----------------
def _dense(key, fan_in, fan_out):
    w = 0.02 * jax.random.normal(key, (fan_in, fan_out), jnp.float32)
    b = jnp.zeros((fan_out,), jnp.float32)
    return w, b


def _ln_params():
    return jnp.stack([jnp.ones((H,), jnp.float32), jnp.zeros((H,), jnp.float32)])


def init_params(key):
    keys = jax.random.split(key, 8 + LAYERS)
    params = {
        "word_emb": 0.02 * jax.random.normal(keys[0], (VOCAB, H), jnp.float32),
        "pos_emb": 0.02 * jax.random.normal(keys[1], (MAX_POS, H), jnp.float32),
        "type_emb": 0.02 * jax.random.normal(keys[2], (TYPES, H), jnp.float32),
        "emb_ln": _ln_params(),
    }
    per = {k: [] for k in ("w_qkv", "b_qkv", "wo", "bo", "ln1",
                           "wi", "bi", "wo2", "bo2", "ln2")}
    scale = 1.0 / (DH ** 0.5)
    for l in range(LAYERS):
        lk = jax.random.split(keys[3 + l], 6)
        wq, bq = _dense(lk[0], H, H)
        wk, bk = _dense(lk[1], H, H)
        wv, bv = _dense(lk[2], H, H)
        wo, bo = _dense(lk[3], H, H)
        wi, bi = _dense(lk[4], H, INTER)
        wo2, bo2 = _dense(lk[5], INTER, H)
        # fold the 1/sqrt(DH) attention scale into the Q weight/bias (zero runtime cost)
        per["w_qkv"].append(jnp.concatenate([wq * scale, wk, wv], axis=1))
        per["b_qkv"].append(jnp.concatenate([bq * scale, bk, bv]).reshape(1, 3 * H))
        per["wo"].append(wo)
        per["bo"].append(bo.reshape(1, H))
        per["ln1"].append(_ln_params())
        per["wi"].append(wi)
        per["bi"].append(bi.reshape(1, INTER))
        per["wo2"].append(wo2)
        per["bo2"].append(bo2.reshape(1, H))
        per["ln2"].append(_ln_params())
    # stack per-layer weights with a leading LAYERS axis; matmul weights stored bf16
    for k, v in per.items():
        stacked = jnp.stack(v)
        if k in ("w_qkv", "wo", "wi", "wo2"):
            stacked = stacked.astype(jnp.bfloat16)
        params[k] = stacked

    wp, bp = _dense(keys[3 + LAYERS], H, H)               # pooler
    wc, bc = _dense(keys[4 + LAYERS], H, NUM_LABELS)      # classifier
    params["wp"] = wp.astype(jnp.bfloat16)
    params["bp"] = bp.reshape(1, H)
    # pad classifier to 128 output lanes (zeros); padded cols masked inside the loss
    wc_pad = jnp.zeros((H, LABEL_PAD), jnp.float32).at[:, :NUM_LABELS].set(wc)
    bc_pad = jnp.zeros((1, LABEL_PAD), jnp.float32).at[0, :NUM_LABELS].set(bc)
    params["wc_pad"] = wc_pad.astype(jnp.bfloat16)
    params["bc_pad"] = bc_pad
    return params


# ---------------- model forward (thin JAX glue around ONE fused kernel) ----------------
def weighted_hatebert_forward(params, class_weights, input_ids,
                              attention_mask=None, labels=None):
    """Returns (loss, logits) mirroring WeightedHateBERT.forward."""
    B, S = input_ids.shape
    if attention_mask is None:
        attention_mask = jnp.ones_like(input_ids)

    # embedding table gathers stay in plain JAX (no clean Pallas gather needed here)
    word = jnp.take(params["word_emb"], input_ids, axis=0)            # (B, S, H)
    pos = params["pos_emb"][:S][None, :, :]
    tok = params["type_emb"][0][None, None, :]                        # token_type_ids = 0
    emb2d = (word + pos + tok).reshape(B * S, H)                      # (B*S, H)

    add_mask = (1.0 - attention_mask.astype(jnp.float32)) * NEG_INF   # (B, S)
    labels2d = (jnp.zeros((B, 1), jnp.int32) if labels is None
                else labels.reshape(B, 1).astype(jnp.int32))
    cw_pad = jnp.zeros((1, LABEL_PAD), jnp.float32).at[0, :NUM_LABELS].set(
        class_weights.astype(jnp.float32))

    logits_pad, loss2d = pallas_fused_forward(emb2d, add_mask, labels2d, cw_pad, params)
    logits = logits_pad[:, :NUM_LABELS]                               # (B, NUM_LABELS)
    loss = None if labels is None else loss2d[0, 0]
    return loss, logits


# ---------------- main ----------------
if __name__ == "__main__":
    key = jax.random.PRNGKey(0)
    kp, kid = jax.random.split(key)
    params = init_params(kp)

    B, S = 2, 8
    input_ids = jax.random.randint(kid, (B, S), 0, VOCAB, dtype=jnp.int32)
    attention_mask = jnp.array(
        [[1, 1, 1, 1, 1, 1, 1, 1],
         [1, 1, 1, 1, 1, 1, 0, 0]], dtype=jnp.int32)
    labels = jnp.array([0, 1], dtype=jnp.int32)
    class_weights = jnp.array([0.3, 0.7], dtype=jnp.float32)

    fwd = jax.jit(weighted_hatebert_forward)
    loss, logits = fwd(params, class_weights, input_ids, attention_mask, labels)
    jax.block_until_ready((loss, logits))
    print("KERNEL_OK")
</pallas_src>

<mosaic_0001>
module attributes {stable_mosaic.version = 11 : i64} {
  func.func @_fused_forward_kernel(%arg0: memref<16x32xf32, #tpu.memory_space<vmem>>, %arg1: memref<2x8xf32, #tpu.memory_space<vmem>>, %arg2: memref<2x1xi32, #tpu.memory_space<vmem>>, %arg3: memref<1x128xf32, #tpu.memory_space<vmem>>, %arg4: memref<2x32xf32, #tpu.memory_space<vmem>>, %arg5: memref<2x32x96xbf16, #tpu.memory_space<vmem>>, %arg6: memref<2x1x96xf32, #tpu.memory_space<vmem>>, %arg7: memref<2x32x32xbf16, #tpu.memory_space<vmem>>, %arg8: memref<2x1x32xf32, #tpu.memory_space<vmem>>, %arg9: memref<2x2x32xf32, #tpu.memory_space<vmem>>, %arg10: memref<2x32x64xbf16, #tpu.memory_space<vmem>>, %arg11: memref<2x1x64xf32, #tpu.memory_space<vmem>>, %arg12: memref<2x64x32xbf16, #tpu.memory_space<vmem>>, %arg13: memref<2x1x32xf32, #tpu.memory_space<vmem>>, %arg14: memref<2x2x32xf32, #tpu.memory_space<vmem>>, %arg15: memref<32x32xbf16, #tpu.memory_space<vmem>>, %arg16: memref<1x32xf32, #tpu.memory_space<vmem>>, %arg17: memref<32x128xbf16, #tpu.memory_space<vmem>>, %arg18: memref<1x128xf32, #tpu.memory_space<vmem>>, %arg19: memref<2x128xf32, #tpu.memory_space<vmem>>, %arg20: memref<1x1xf32, #tpu.memory_space<vmem>>, %arg21: memref<16x32xf32, #tpu.memory_space<vmem>>) attributes {dimension_semantics = [], scalar_prefetch = 0 : i64, scratch_operands = 1 : i64, tpu.core_type = #tpu.core_type<tc>} {
    %c0 = arith.constant 0 : index
    %c0_0 = arith.constant 0 : index
    %0 = vector.load %arg0[%c0, %c0_0] : memref<16x32xf32, #tpu.memory_space<vmem>>, vector<16x32xf32>
    %c0_1 = arith.constant 0 : index
    %c0_2 = arith.constant 0 : index
    %1 = vector.load %arg4[%c0_1, %c0_2] : memref<2x32xf32, #tpu.memory_space<vmem>>, vector<1x32xf32>
    %c1 = arith.constant 1 : index
    %c0_3 = arith.constant 0 : index
    %2 = vector.load %arg4[%c1, %c0_3] : memref<2x32xf32, #tpu.memory_space<vmem>>, vector<1x32xf32>
    %cst = arith.constant dense<0.000000e+00> : vector<16xf32>
    %3 = vector.multi_reduction <add>, %0, %cst [1] : vector<16x32xf32> to vector<16xf32>
    %4 = vector.shape_cast %3 : vector<16xf32> to vector<16x1xf32>
    %cst_4 = arith.constant 3.200000e+01 : f32
    %5 = vector.broadcast %cst_4 : f32 to vector<16x1xf32>
    %6 = arith.divf %4, %5 : vector<16x1xf32>
    %7 = vector.broadcast %6 : vector<16x1xf32> to vector<16x32xf32>
    %8 = arith.subf %0, %7 : vector<16x32xf32>
    %9 = arith.mulf %8, %8 : vector<16x32xf32>
    %cst_5 = arith.constant dense<0.000000e+00> : vector<16xf32>
    %10 = vector.multi_reduction <add>, %9, %cst_5 [1] : vector<16x32xf32> to vector<16xf32>
    %11 = vector.shape_cast %10 : vector<16xf32> to vector<16x1xf32>
    %cst_6 = arith.constant 3.200000e+01 : f32
    %12 = vector.broadcast %cst_6 : f32 to vector<16x1xf32>
    %13 = arith.divf %11, %12 : vector<16x1xf32>
    %14 = vector.broadcast %6 : vector<16x1xf32> to vector<16x32xf32>
    %15 = arith.subf %0, %14 : vector<16x32xf32>
    %cst_7 = arith.constant 9.99999996E-13 : f32
    %16 = vector.broadcast %cst_7 : f32 to vector<16x1xf32>
    %17 = arith.addf %13, %16 : vector<16x1xf32>
    %18 = math.rsqrt %17 : vector<16x1xf32>
    %19 = vector.broadcast %18 : vector<16x1xf32> to vector<16x32xf32>
    %20 = arith.mulf %15, %19 : vector<16x32xf32>
    %21 = vector.broadcast %1 : vector<1x32xf32> to vector<16x32xf32>
    %22 = arith.mulf %20, %21 : vector<16x32xf32>
    %23 = vector.broadcast %2 : vector<1x32xf32> to vector<16x32xf32>
    %24 = arith.addf %22, %23 : vector<16x32xf32>
    %c0_8 = arith.constant 0 : index
    %c0_9 = arith.constant 0 : index
    %c0_10 = arith.constant 0 : index
    %25 = vector.load %arg5[%c0_8, %c0_9, %c0_10] : memref<2x32x96xbf16, #tpu.memory_space<vmem>>, vector<1x32x96xbf16>
    %26 = vector.shape_cast %25 : vector<1x32x96xbf16> to vector<32x96xbf16>
    %27 = arith.truncf %24 : vector<16x32xf32> to vector<16x32xbf16>
    %cst_11 = arith.constant dense<0.000000e+00> : vector<16x96xf32>
    %28 = tpu.matmul %27, %26, %cst_11 {dimension_numbers = #tpu.dot_dimension_numbers<[1], [0], [0], [1], [0, 0, 1, 1], [], []>} : vector<16x32xbf16>, vector<32x96xbf16>, vector<16x96xf32> -> vector<16x96xf32>
    %c0_12 = arith.constant 0 : index
    %c0_13 = arith.constant 0 : index
    %c0_14 = arith.constant 0 : index
    %29 = vector.load %arg6[%c0_12, %c0_13, %c0_14] : memref<2x1x96xf32, #tpu.memory_space<vmem>>, vector<1x1x96xf32>
    %30 = vector.shape_cast %29 : vector<1x1x96xf32> to vector<1x96xf32>
    %31 = vector.broadcast %30 : vector<1x96xf32> to vector<16x96xf32>
    %32 = arith.addf %28, %31 : vector<16x96xf32>
    %33 = vector.extract_strided_slice %32 {offsets = [0, 0], sizes = [16, 32], strides = [1, 1]} : vector<16x96xf32> to vector<16x32xf32>
    %34 = vector.extract_strided_slice %32 {offsets = [0, 32], sizes = [16, 32], strides = [1, 1]} : vector<16x96xf32> to vector<16x32xf32>
    %35 = vector.extract_strided_slice %32 {offsets = [0, 64], sizes = [16, 32], strides = [1, 1]} : vector<16x96xf32> to vector<16x32xf32>
    %c0_15 = arith.constant 0 : index
    %c0_16 = arith.constant 0 : index
    %36 = vector.load %arg1[%c0_15, %c0_16] : memref<2x8xf32, #tpu.memory_space<vmem>>, vector<1x8xf32>
    %37 = vector.extract_strided_slice %33 {offsets = [0, 0], sizes = [8, 16], strides = [1, 1]} : vector<16x32xf32> to vector<8x16xf32>
    %38 = arith.truncf %37 : vector<8x16xf32> to vector<8x16xbf16>
    %39 = vector.extract_strided_slice %34 {offsets = [0, 0], sizes = [8, 16], strides = [1, 1]} : vector<16x32xf32> to vector<8x16xf32>
    %40 = arith.truncf %39 : vector<8x16xf32> to vector<8x16xbf16>
    %41 = vector.extract_strided_slice %35 {offsets = [0, 0], sizes = [8, 16], strides = [1, 1]} : vector<16x32xf32> to vector<8x16xf32>
    %42 = arith.truncf %41 : vector<8x16xf32> to vector<8x16xbf16>
    %cst_17 = arith.constant dense<0.000000e+00> : vector<8x8xf32>
    %43 = tpu.matmul %38, %40, %cst_17 {dimension_numbers = #tpu.dot_dimension_numbers<[1], [1], [0], [0], [0, 0, 1, 0], [], []>} : vector<8x16xbf16>, vector<8x16xbf16>, vector<8x8xf32> -> vector<8x8xf32>
    %44 = vector.broadcast %36 : vector<1x8xf32> to vector<8x8xf32>
    %45 = arith.addf %43, %44 : vector<8x8xf32>
    %cst_18 = arith.constant dense<0xFF800000> : vector<8xf32>
    %46 = vector.multi_reduction <maximumf>, %45, %cst_18 [1] : vector<8x8xf32> to vector<8xf32>
    %47 = vector.shape_cast %46 : vector<8xf32> to vector<8x1xf32>
    %48 = vector.broadcast %47 : vector<8x1xf32> to vector<8x8xf32>
    %49 = arith.subf %45, %48 : vector<8x8xf32>
    %50 = math.exp %49 : vector<8x8xf32>
    %cst_19 = arith.constant dense<0.000000e+00> : vector<8xf32>
    %51 = vector.multi_reduction <add>, %50, %cst_19 [1] : vector<8x8xf32> to vector<8xf32>
    %52 = vector.shape_cast %51 : vector<8xf32> to vector<8x1xf32>
    %53 = vector.broadcast %52 : vector<8x1xf32> to vector<8x8xf32>
    %54 = arith.divf %50, %53 : vector<8x8xf32>
    %55 = arith.truncf %54 : vector<8x8xf32> to vector<8x8xbf16>
    %cst_20 = arith.constant dense<0.000000e+00> : vector<8x16xf32>
    %56 = tpu.matmul %55, %42, %cst_20 {dimension_numbers = #tpu.dot_dimension_numbers<[1], [0], [0], [1], [0, 0, 1, 1], [], []>} : vector<8x8xbf16>, vector<8x16xbf16>, vector<8x16xf32> -> vector<8x16xf32>
    %c0_21 = arith.constant 0 : index
    %c0_22 = arith.constant 0 : index
    %57 = vector.load %arg21[%c0_21, %c0_22] : memref<16x32xf32, #tpu.memory_space<vmem>>, vector<8x16xf32>
    tpu.vector_store %arg21[%c0_21, %c0_22], %56 {strides = array<i32>} : memref<16x32xf32, #tpu.memory_space<vmem>>, vector<8x16xf32>,
    %58 = vector.extract_strided_slice %33 {offsets = [0, 16], sizes = [8, 16], strides = [1, 1]} : vector<16x32xf32> to vector<8x16xf32>
    %59 = arith.truncf %58 : vector<8x16xf32> to vector<8x16xbf16>
    %60 = vector.extract_strided_slice %34 {offsets = [0, 16], sizes = [8, 16], strides = [1, 1]} : vector<16x32xf32> to vector<8x16xf32>
    %61 = arith.truncf %60 : vector<8x16xf32> to vector<8x16xbf16>
    %62 = vector.extract_strided_slice %35 {offsets = [0, 16], sizes = [8, 16], strides = [1, 1]} : vector<16x32xf32> to vector<8x16xf32>
    %63 = arith.truncf %62 : vector<8x16xf32> to vector<8x16xbf16>
    %cst_23 = arith.constant dense<0.000000e+00> : vector<8x8xf32>
    %64 = tpu.matmul %59, %61, %cst_23 {dimension_numbers = #tpu.dot_dimension_numbers<[1], [1], [0], [0], [0, 0, 1, 0], [], []>} : vector<8x16xbf16>, vector<8x16xbf16>, vector<8x8xf32> -> vector<8x8xf32>
    %65 = vector.broadcast %36 : vector<1x8xf32> to vector<8x8xf32>
    %66 = arith.addf %64, %65 : vector<8x8xf32>
    %cst_24 = arith.constant dense<0xFF800000> : vector<8xf32>
    %67 = vector.multi_reduction <maximumf>, %66, %cst_24 [1] : vector<8x8xf32> to vector<8xf32>
    %68 = vector.shape_cast %67 : vector<8xf32> to vector<8x1xf32>
    %69 = vector.broadcast %68 : vector<8x1xf32> to vector<8x8xf32>
    %70 = arith.subf %66, %69 : vector<8x8xf32>
    %71 = math.exp %70 : vector<8x8xf32>
    %cst_25 = arith.constant dense<0.000000e+00> : vector<8xf32>
    %72 = vector.multi_reduction <add>, %71, %cst_25 [1] : vector<8x8xf32> to vector<8xf32>
    %73 = vector.shape_cast %72 : vector<8xf32> to vector<8x1xf32>
    %74 = vector.broadcast %73 : vector<8x1xf32> to vector<8x8xf32>
    %75 = arith.divf %71, %74 : vector<8x8xf32>
    %76 = arith.truncf %75 : vector<8x8xf32> to vector<8x8xbf16>
    %cst_26 = arith.constant dense<0.000000e+00> : vector<8x16xf32>
    %77 = tpu.matmul %76, %63, %cst_26 {dimension_numbers = #tpu.dot_dimension_numbers<[1], [0], [0], [1], [0, 0, 1, 1], [], []>} : vector<8x8xbf16>, vector<8x16xbf16>, vector<8x16xf32> -> vector<8x16xf32>
    %c0_27 = arith.constant 0 : index
    %c16 = arith.constant 16 : index
    %78 = vector.load %arg21[%c0_27, %c16] : memref<16x32xf32, #tpu.memory_space<vmem>>, vector<8x16xf32>
    tpu.vector_store %arg21[%c0_27, %c16], %77 {strides = array<i32>} : memref<16x32xf32, #tpu.memory_space<vmem>>, vector<8x16xf32>,
    %c1_28 = arith.constant 1 : index
    %c0_29 = arith.constant 0 : index
    %79 = vector.load %arg1[%c1_28, %c0_29] : memref<2x8xf32, #tpu.memory_space<vmem>>, vector<1x8xf32>
    %80 = vector.extract_strided_slice %33 {offsets = [8, 0], sizes = [8, 16], strides = [1, 1]} : vector<16x32xf32> to vector<8x16xf32>
    %81 = arith.truncf %80 : vector<8x16xf32> to vector<8x16xbf16>
    %82 = vector.extract_strided_slice %34 {offsets = [8, 0], sizes = [8, 16], strides = [1, 1]} : vector<16x32xf32> to vector<8x16xf32>
    %83 = arith.truncf %82 : vector<8x16xf32> to vector<8x16xbf16>
    %84 = vector.extract_strided_slice %35 {offsets = [8, 0], sizes = [8, 16], strides = [1, 1]} : vector<16x32xf32> to vector<8x16xf32>
    %85 = arith.truncf %84 : vector<8x16xf32> to vector<8x16xbf16>
    %cst_30 = arith.constant dense<0.000000e+00> : vector<8x8xf32>
    %86 = tpu.matmul %81, %83, %cst_30 {dimension_numbers = #tpu.dot_dimension_numbers<[1], [1], [0], [0], [0, 0, 1, 0], [], []>} : vector<8x16xbf16>, vector<8x16xbf16>, vector<8x8xf32> -> vector<8x8xf32>
    %87 = vector.broadcast %79 : vector<1x8xf32> to vector<8x8xf32>
    %88 = arith.addf %86, %87 : vector<8x8xf32>
    %cst_31 = arith.constant dense<0xFF800000> : vector<8xf32>
    %89 = vector.multi_reduction <maximumf>, %88, %cst_31 [1] : vector<8x8xf32> to vector<8xf32>
    %90 = vector.shape_cast %89 : vector<8xf32> to vector<8x1xf32>
    %91 = vector.broadcast %90 : vector<8x1xf32> to vector<8x8xf32>
    %92 = arith.subf %88, %91 : vector<8x8xf32>
    %93 = math.exp %92 : vector<8x8xf32>
    %cst_32 = arith.constant dense<0.000000e+00> : vector<8xf32>
    %94 = vector.multi_reduction <add>, %93, %cst_32 [1] : vector<8x8xf32> to vector<8xf32>
    %95 = vector.shape_cast %94 : vector<8xf32> to vector<8x1xf32>
    %96 = vector.broadcast %95 : vector<8x1xf32> to vector<8x8xf32>
    %97 = arith.divf %93, %96 : vector<8x8xf32>
    %98 = arith.truncf %97 : vector<8x8xf32> to vector<8x8xbf16>
    %cst_33 = arith.constant dense<0.000000e+00> : vector<8x16xf32>
    %99 = tpu.matmul %98, %85, %cst_33 {dimension_numbers = #tpu.dot_dimension_numbers<[1], [0], [0], [1], [0, 0, 1, 1], [], []>} : vector<8x8xbf16>, vector<8x16xbf16>, vector<8x16xf32> -> vector<8x16xf32>
    %c8 = arith.constant 8 : index
    %c0_34 = arith.constant 0 : index
    %100 = vector.load %arg21[%c8, %c0_34] : memref<16x32xf32, #tpu.memory_space<vmem>>, vector<8x16xf32>
    tpu.vector_store %arg21[%c8, %c0_34], %99 {strides = array<i32>} : memref<16x32xf32, #tpu.memory_space<vmem>>, vector<8x16xf32>,
    %101 = vector.extract_strided_slice %33 {offsets = [8, 16], sizes = [8, 16], strides = [1, 1]} : vector<16x32xf32> to vector<8x16xf32>
    %102 = arith.truncf %101 : vector<8x16xf32> to vector<8x16xbf16>
    %103 = vector.extract_strided_slice %34 {offsets = [8, 16], sizes = [8, 16], strides = [1, 1]} : vector<16x32xf32> to vector<8x16xf32>
    %104 = arith.truncf %103 : vector<8x16xf32> to vector<8x16xbf16>
    %105 = vector.extract_strided_slice %35 {offsets = [8, 16], sizes = [8, 16], strides = [1, 1]} : vector<16x32xf32> to vector<8x16xf32>
    %106 = arith.truncf %105 : vector<8x16xf32> to vector<8x16xbf16>
    %cst_35 = arith.constant dense<0.000000e+00> : vector<8x8xf32>
    %107 = tpu.matmul %102, %104, %cst_35 {dimension_numbers = #tpu.dot_dimension_numbers<[1], [1], [0], [0], [0, 0, 1, 0], [], []>} : vector<8x16xbf16>, vector<8x16xbf16>, vector<8x8xf32> -> vector<8x8xf32>
    %108 = vector.broadcast %79 : vector<1x8xf32> to vector<8x8xf32>
    %109 = arith.addf %107, %108 : vector<8x8xf32>
    %cst_36 = arith.constant dense<0xFF800000> : vector<8xf32>
    %110 = vector.multi_reduction <maximumf>, %109, %cst_36 [1] : vector<8x8xf32> to vector<8xf32>
    %111 = vector.shape_cast %110 : vector<8xf32> to vector<8x1xf32>
    %112 = vector.broadcast %111 : vector<8x1xf32> to vector<8x8xf32>
    %113 = arith.subf %109, %112 : vector<8x8xf32>
    %114 = math.exp %113 : vector<8x8xf32>
    %cst_37 = arith.constant dense<0.000000e+00> : vector<8xf32>
    %115 = vector.multi_reduction <add>, %114, %cst_37 [1] : vector<8x8xf32> to vector<8xf32>
    %116 = vector.shape_cast %115 : vector<8xf32> to vector<8x1xf32>
    %117 = vector.broadcast %116 : vector<8x1xf32> to vector<8x8xf32>
    %118 = arith.divf %114, %117 : vector<8x8xf32>
    %119 = arith.truncf %118 : vector<8x8xf32> to vector<8x8xbf16>
    %cst_38 = arith.constant dense<0.000000e+00> : vector<8x16xf32>
    %120 = tpu.matmul %119, %106, %cst_38 {dimension_numbers = #tpu.dot_dimension_numbers<[1], [0], [0], [1], [0, 0, 1, 1], [], []>} : vector<8x8xbf16>, vector<8x16xbf16>, vector<8x16xf32> -> vector<8x16xf32>
    %c8_39 = arith.constant 8 : index
    %c16_40 = arith.constant 16 : index
    %121 = vector.load %arg21[%c8_39, %c16_40] : memref<16x32xf32, #tpu.memory_space<vmem>>, vector<8x16xf32>
    tpu.vector_store %arg21[%c8_39, %c16_40], %120 {strides = array<i32>} : memref<16x32xf32, #tpu.memory_space<vmem>>, vector<8x16xf32>,
    %c0_41 = arith.constant 0 : index
    %c0_42 = arith.constant 0 : index
    %122 = vector.load %arg21[%c0_41, %c0_42] : memref<16x32xf32, #tpu.memory_space<vmem>>, vector<16x32xf32>
    %c0_43 = arith.constant 0 : index
    %c0_44 = arith.constant 0 : index
    %c0_45 = arith.constant 0 : index
    %123 = vector.load %arg7[%c0_43, %c0_44, %c0_45] : memref<2x32x32xbf16, #tpu.memory_space<vmem>>, vector<1x32x32xbf16>
    %124 = vector.shape_cast %123 : vector<1x32x32xbf16> to vector<32x32xbf16>
    %125 = arith.truncf %122 : vector<16x32xf32> to vector<16x32xbf16>
    %cst_46 = arith.constant dense<0.000000e+00> : vector<16x32xf32>
    %126 = tpu.matmul %125, %124, %cst_46 {dimension_numbers = #tpu.dot_dimension_numbers<[1], [0], [0], [1], [0, 0, 1, 1], [], []>} : vector<16x32xbf16>, vector<32x32xbf16>, vector<16x32xf32> -> vector<16x32xf32>
    %c0_47 = arith.constant 0 : index
    %c0_48 = arith.constant 0 : index
    %c0_49 = arith.constant 0 : index
    %127 = vector.load %arg8[%c0_47, %c0_48, %c0_49] : memref<2x1x32xf32, #tpu.memory_space<vmem>>, vector<1x1x32xf32>
    %128 = vector.shape_cast %127 : vector<1x1x32xf32> to vector<1x32xf32>
    %129 = vector.broadcast %128 : vector<1x32xf32> to vector<16x32xf32>
    %130 = arith.addf %126, %129 : vector<16x32xf32>
    %131 = arith.addf %130, %24 : vector<16x32xf32>
    %c0_50 = arith.constant 0 : index
    %c0_51 = arith.constant 0 : index
    %c0_52 = arith.constant 0 : index
    %132 = vector.load %arg9[%c0_50, %c0_51, %c0_52] : memref<2x2x32xf32, #tpu.memory_space<vmem>>, vector<1x2x32xf32>
    %133 = vector.shape_cast %132 : vector<1x2x32xf32> to vector<2x32xf32>
    %134 = vector.extract_strided_slice %133 {offsets = [0, 0], sizes = [1, 32], strides = [1, 1]} : vector<2x32xf32> to vector<1x32xf32>
    %135 = vector.extract_strided_slice %133 {offsets = [1, 0], sizes = [1, 32], strides = [1, 1]} : vector<2x32xf32> to vector<1x32xf32>
    %cst_53 = arith.constant dense<0.000000e+00> : vector<16xf32>
    %136 = vector.multi_reduction <add>, %131, %cst_53 [1] : vector<16x32xf32> to vector<16xf32>
    %137 = vector.shape_cast %136 : vector<16xf32> to vector<16x1xf32>
    %cst_54 = arith.constant 3.200000e+01 : f32
    %138 = vector.broadcast %cst_54 : f32 to vector<16x1xf32>
    %139 = arith.divf %137, %138 : vector<16x1xf32>
    %140 = vector.broadcast %139 : vector<16x1xf32> to vector<16x32xf32>
    %141 = arith.subf %131, %140 : vector<16x32xf32>
    %142 = arith.mulf %141, %141 : vector<16x32xf32>
    %cst_55 = arith.constant dense<0.000000e+00> : vector<16xf32>
    %143 = vector.multi_reduction <add>, %142, %cst_55 [1] : vector<16x32xf32> to vector<16xf32>
    %144 = vector.shape_cast %143 : vector<16xf32> to vector<16x1xf32>
    %cst_56 = arith.constant 3.200000e+01 : f32
    %145 = vector.broadcast %cst_56 : f32 to vector<16x1xf32>
    %146 = arith.divf %144, %145 : vector<16x1xf32>
    %147 = vector.broadcast %139 : vector<16x1xf32> to vector<16x32xf32>
    %148 = arith.subf %131, %147 : vector<16x32xf32>
    %cst_57 = arith.constant 9.99999996E-13 : f32
    %149 = vector.broadcast %cst_57 : f32 to vector<16x1xf32>
    %150 = arith.addf %146, %149 : vector<16x1xf32>
    %151 = math.rsqrt %150 : vector<16x1xf32>
    %152 = vector.broadcast %151 : vector<16x1xf32> to vector<16x32xf32>
    %153 = arith.mulf %148, %152 : vector<16x32xf32>
    %154 = vector.broadcast %134 : vector<1x32xf32> to vector<16x32xf32>
    %155 = arith.mulf %153, %154 : vector<16x32xf32>
    %156 = vector.broadcast %135 : vector<1x32xf32> to vector<16x32xf32>
    %157 = arith.addf %155, %156 : vector<16x32xf32>
    %c0_58 = arith.constant 0 : index
    %c0_59 = arith.constant 0 : index
    %c0_60 = arith.constant 0 : index
    %158 = vector.load %arg10[%c0_58, %c0_59, %c0_60] : memref<2x32x64xbf16, #tpu.memory_space<vmem>>, vector<1x32x64xbf16>
    %159 = vector.shape_cast %158 : vector<1x32x64xbf16> to vector<32x64xbf16>
    %160 = arith.truncf %157 : vector<16x32xf32> to vector<16x32xbf16>
    %cst_61 = arith.constant dense<0.000000e+00> : vector<16x64xf32>
    %161 = tpu.matmul %160, %159, %cst_61 {dimension_numbers = #tpu.dot_dimension_numbers<[1], [0], [0], [1], [0, 0, 1, 1], [], []>} : vector<16x32xbf16>, vector<32x64xbf16>, vector<16x64xf32> -> vector<16x64xf32>
    %c0_62 = arith.constant 0 : index
    %c0_63 = arith.constant 0 : index
    %c0_64 = arith.constant 0 : index
    %162 = vector.load %arg11[%c0_62, %c0_63, %c0_64] : memref<2x1x64xf32, #tpu.memory_space<vmem>>, vector<1x1x64xf32>
    %163 = vector.shape_cast %162 : vector<1x1x64xf32> to vector<1x64xf32>
    %164 = vector.broadcast %163 : vector<1x64xf32> to vector<16x64xf32>
    %165 = arith.addf %161, %164 : vector<16x64xf32>
    %166 = arith.mulf %165, %165 : vector<16x64xf32>
    %167 = arith.mulf %165, %166 : vector<16x64xf32>
    %cst_65 = arith.constant 4.471500e-02 : f32
    %168 = vector.broadcast %cst_65 : f32 to vector<16x64xf32>
    %169 = arith.mulf %168, %167 : vector<16x64xf32>
    %170 = arith.addf %165, %169 : vector<16x64xf32>
    %cst_66 = arith.constant 0.797884583 : f32
    %171 = vector.broadcast %cst_66 : f32 to vector<16x64xf32>
    %172 = arith.mulf %171, %170 : vector<16x64xf32>
    %173 = math.tanh %172 : vector<16x64xf32>
    %cst_67 = arith.constant 1.000000e+00 : f32
    %174 = vector.broadcast %cst_67 : f32 to vector<16x64xf32>
    %175 = arith.addf %174, %173 : vector<16x64xf32>
    %cst_68 = arith.constant 5.000000e-01 : f32
    %176 = vector.broadcast %cst_68 : f32 to vector<16x64xf32>
    %177 = arith.mulf %176, %175 : vector<16x64xf32>
    %178 = arith.mulf %165, %177 : vector<16x64xf32>
    %c0_69 = arith.constant 0 : index
    %c0_70 = arith.constant 0 : index
    %c0_71 = arith.constant 0 : index
    %179 = vector.load %arg12[%c0_69, %c0_70, %c0_71] : memref<2x64x32xbf16, #tpu.memory_space<vmem>>, vector<1x64x32xbf16>
    %180 = vector.shape_cast %179 : vector<1x64x32xbf16> to vector<64x32xbf16>
    %181 = arith.truncf %178 : vector<16x64xf32> to vector<16x64xbf16>
    %cst_72 = arith.constant dense<0.000000e+00> : vector<16x32xf32>
    %182 = tpu.matmul %181, %180, %cst_72 {dimension_numbers = #tpu.dot_dimension_numbers<[1], [0], [0], [1], [0, 0, 1, 1], [], []>} : vector<16x64xbf16>, vector<64x32xbf16>, vector<16x32xf32> -> vector<16x32xf32>
    %c0_73 = arith.constant 0 : index
    %c0_74 = arith.constant 0 : index
    %c0_75 = arith.constant 0 : index
    %183 = vector.load %arg13[%c0_73, %c0_74, %c0_75] : memref<2x1x32xf32, #tpu.memory_space<vmem>>, vector<1x1x32xf32>
    %184 = vector.shape_cast %183 : vector<1x1x32xf32> to vector<1x32xf32>
    %185 = vector.broadcast %184 : vector<1x32xf32> to vector<16x32xf32>
    %186 = arith.addf %182, %185 : vector<16x32xf32>
    %187 = arith.addf %186, %157 : vector<16x32xf32>
    %c0_76 = arith.constant 0 : index
    %c0_77 = arith.constant 0 : index
    %c0_78 = arith.constant 0 : index
    %188 = vector.load %arg14[%c0_76, %c0_77, %c0_78] : memref<2x2x32xf32, #tpu.memory_space<vmem>>, vector<1x2x32xf32>
    %189 = vector.shape_cast %188 : vector<1x2x32xf32> to vector<2x32xf32>
    %190 = vector.extract_strided_slice %189 {offsets = [0, 0], sizes = [1, 32], strides = [1, 1]} : vector<2x32xf32> to vector<1x32xf32>
    %191 = vector.extract_strided_slice %189 {offsets = [1, 0], sizes = [1, 32], strides = [1, 1]} : vector<2x32xf32> to vector<1x32xf32>
    %cst_79 = arith.constant dense<0.000000e+00> : vector<16xf32>
    %192 = vector.multi_reduction <add>, %187, %cst_79 [1] : vector<16x32xf32> to vector<16xf32>
    %193 = vector.shape_cast %192 : vector<16xf32> to vector<16x1xf32>
    %cst_80 = arith.constant 3.200000e+01 : f32
    %194 = vector.broadcast %cst_80 : f32 to vector<16x1xf32>
    %195 = arith.divf %193, %194 : vector<16x1xf32>
    %196 = vector.broadcast %195 : vector<16x1xf32> to vector<16x32xf32>
    %197 = arith.subf %187, %196 : vector<16x32xf32>
    %198 = arith.mulf %197, %197 : vector<16x32xf32>
    %cst_81 = arith.constant dense<0.000000e+00> : vector<16xf32>
    %199 = vector.multi_reduction <add>, %198, %cst_81 [1] : vector<16x32xf32> to vector<16xf32>
    %200 = vector.shape_cast %199 : vector<16xf32> to vector<16x1xf32>
    %cst_82 = arith.constant 3.200000e+01 : f32
    %201 = vector.broadcast %cst_82 : f32 to vector<16x1xf32>
    %202 = arith.divf %200, %201 : vector<16x1xf32>
    %203 = vector.broadcast %195 : vector<16x1xf32> to vector<16x32xf32>
    %204 = arith.subf %187, %203 : vector<16x32xf32>
    %cst_83 = arith.constant 9.99999996E-13 : f32
    %205 = vector.broadcast %cst_83 : f32 to vector<16x1xf32>
    %206 = arith.addf %202, %205 : vector<16x1xf32>
    %207 = math.rsqrt %206 : vector<16x1xf32>
    %208 = vector.broadcast %207 : vector<16x1xf32> to vector<16x32xf32>
    %209 = arith.mulf %204, %208 : vector<16x32xf32>
    %210 = vector.broadcast %190 : vector<1x32xf32> to vector<16x32xf32>
    %211 = arith.mulf %209, %210 : vector<16x32xf32>
    %212 = vector.broadcast %191 : vector<1x32xf32> to vector<16x32xf32>
    %213 = arith.addf %211, %212 : vector<16x32xf32>
    %c1_84 = arith.constant 1 : index
    %c0_85 = arith.constant 0 : index
    %c0_86 = arith.constant 0 : index
    %214 = vector.load %arg5[%c1_84, %c0_85, %c0_86] : memref<2x32x96xbf16, #tpu.memory_space<vmem>>, vector<1x32x96xbf16>
    %215 = vector.shape_cast %214 : vector<1x32x96xbf16> to vector<32x96xbf16>
    %216 = arith.truncf %213 : vector<16x32xf32> to vector<16x32xbf16>
    %cst_87 = arith.constant dense<0.000000e+00> : vector<16x96xf32>
    %217 = tpu.matmul %216, %215, %cst_87 {dimension_numbers = #tpu.dot_dimension_numbers<[1], [0], [0], [1], [0, 0, 1, 1], [], []>} : vector<16x32xbf16>, vector<32x96xbf16>, vector<16x96xf32> -> vector<16x96xf32>
    %c1_88 = arith.constant 1 : index
    %c0_89 = arith.constant 0 : index
    %c0_90 = arith.constant 0 : index
    %218 = vector.load %arg6[%c1_88, %c0_89, %c0_90] : memref<2x1x96xf32, #tpu.memory_space<vmem>>, vector<1x1x96xf32>
    %219 = vector.shape_cast %218 : vector<1x1x96xf32> to vector<1x96xf32>
    %220 = vector.broadcast %219 : vector<1x96xf32> to vector<16x96xf32>
    %221 = arith.addf %217, %220 : vector<16x96xf32>
    %222 = vector.extract_strided_slice %221 {offsets = [0, 0], sizes = [16, 32], strides = [1, 1]} : vector<16x96xf32> to vector<16x32xf32>
    %223 = vector.extract_strided_slice %221 {offsets = [0, 32], sizes = [16, 32], strides = [1, 1]} : vector<16x96xf32> to vector<16x32xf32>
    %224 = vector.extract_strided_slice %221 {offsets = [0, 64], sizes = [16, 32], strides = [1, 1]} : vector<16x96xf32> to vector<16x32xf32>
    %c0_91 = arith.constant 0 : index
    %c0_92 = arith.constant 0 : index
    %225 = vector.load %arg1[%c0_91, %c0_92] : memref<2x8xf32, #tpu.memory_space<vmem>>, vector<1x8xf32>
    %226 = vector.extract_strided_slice %222 {offsets = [0, 0], sizes = [8, 16], strides = [1, 1]} : vector<16x32xf32> to vector<8x16xf32>
    %227 = arith.truncf %226 : vector<8x16xf32> to vector<8x16xbf16>
    %228 = vector.extract_strided_slice %223 {offsets = [0, 0], sizes = [8, 16], strides = [1, 1]} : vector<16x32xf32> to vector<8x16xf32>
    %229 = arith.truncf %228 : vector<8x16xf32> to vector<8x16xbf16>
    %230 = vector.extract_strided_slice %224 {offsets = [0, 0], sizes = [8, 16], strides = [1, 1]} : vector<16x32xf32> to vector<8x16xf32>
    %231 = arith.truncf %230 : vector<8x16xf32> to vector<8x16xbf16>
    %cst_93 = arith.constant dense<0.000000e+00> : vector<8x8xf32>
    %232 = tpu.matmul %227, %229, %cst_93 {dimension_numbers = #tpu.dot_dimension_numbers<[1], [1], [0], [0], [0, 0, 1, 0], [], []>} : vector<8x16xbf16>, vector<8x16xbf16>, vector<8x8xf32> -> vector<8x8xf32>
    %233 = vector.broadcast %225 : vector<1x8xf32> to vector<8x8xf32>
    %234 = arith.addf %232, %233 : vector<8x8xf32>
    %cst_94 = arith.constant dense<0xFF800000> : vector<8xf32>
    %235 = vector.multi_reduction <maximumf>, %234, %cst_94 [1] : vector<8x8xf32> to vector<8xf32>
    %236 = vector.shape_cast %235 : vector<8xf32> to vector<8x1xf32>
    %237 = vector.broadcast %236 : vector<8x1xf32> to vector<8x8xf32>
    %238 = arith.subf %234, %237 : vector<8x8xf32>
    %239 = math.exp %238 : vector<8x8xf32>
    %cst_95 = arith.constant dense<0.000000e+00> : vector<8xf32>
    %240 = vector.multi_reduction <add>, %239, %cst_95 [1] : vector<8x8xf32> to vector<8xf32>
    %241 = vector.shape_cast %240 : vector<8xf32> to vector<8x1xf32>
    %242 = vector.broadcast %241 : vector<8x1xf32> to vector<8x8xf32>
    %243 = arith.divf %239, %242 : vector<8x8xf32>
    %244 = arith.truncf %243 : vector<8x8xf32> to vector<8x8xbf16>
    %cst_96 = arith.constant dense<0.000000e+00> : vector<8x16xf32>
    %245 = tpu.matmul %244, %231, %cst_96 {dimension_numbers = #tpu.dot_dimension_numbers<[1], [0], [0], [1], [0, 0, 1, 1], [], []>} : vector<8x8xbf16>, vector<8x16xbf16>, vector<8x16xf32> -> vector<8x16xf32>
    %c0_97 = arith.constant 0 : index
    %c0_98 = arith.constant 0 : index
    %246 = vector.load %arg21[%c0_97, %c0_98] : memref<16x32xf32, #tpu.memory_space<vmem>>, vector<8x16xf32>
    tpu.vector_store %arg21[%c0_97, %c0_98], %245 {strides = array<i32>} : memref<16x32xf32, #tpu.memory_space<vmem>>, vector<8x16xf32>,
    %247 = vector.extract_strided_slice %222 {offsets = [0, 16], sizes = [8, 16], strides = [1, 1]} : vector<16x32xf32> to vector<8x16xf32>
    %248 = arith.truncf %247 : vector<8x16xf32> to vector<8x16xbf16>
    %249 = vector.extract_strided_slice %223 {offsets = [0, 16], sizes = [8, 16], strides = [1, 1]} : vector<16x32xf32> to vector<8x16xf32>
    %250 = arith.truncf %249 : vector<8x16xf32> to vector<8x16xbf16>
    %251 = vector.extract_strided_slice %224 {offsets = [0, 16], sizes = [8, 16], strides = [1, 1]} : vector<16x32xf32> to vector<8x16xf32>
    %252 = arith.truncf %251 : vector<8x16xf32> to vector<8x16xbf16>
    %cst_99 = arith.constant dense<0.000000e+00> : vector<8x8xf32>
    %253 = tpu.matmul %248, %250, %cst_99 {dimension_numbers = #tpu.dot_dimension_numbers<[1], [1], [0], [0], [0, 0, 1, 0], [], []>} : vector<8x16xbf16>, vector<8x16xbf16>, vector<8x8xf32> -> vector<8x8xf32>
    %254 = vector.broadcast %225 : vector<1x8xf32> to vector<8x8xf32>
    %255 = arith.addf %253, %254 : vector<8x8xf32>
    %cst_100 = arith.constant dense<0xFF800000> : vector<8xf32>
    %256 = vector.multi_reduction <maximumf>, %255, %cst_100 [1] : vector<8x8xf32> to vector<8xf32>
    %257 = vector.shape_cast %256 : vector<8xf32> to vector<8x1xf32>
    %258 = vector.broadcast %257 : vector<8x1xf32> to vector<8x8xf32>
    %259 = arith.subf %255, %258 : vector<8x8xf32>
    %260 = math.exp %259 : vector<8x8xf32>
    %cst_101 = arith.constant dense<0.000000e+00> : vector<8xf32>
    %261 = vector.multi_reduction <add>, %260, %cst_101 [1] : vector<8x8xf32> to vector<8xf32>
    %262 = vector.shape_cast %261 : vector<8xf32> to vector<8x1xf32>
    %263 = vector.broadcast %262 : vector<8x1xf32> to vector<8x8xf32>
    %264 = arith.divf %260, %263 : vector<8x8xf32>
    %265 = arith.truncf %264 : vector<8x8xf32> to vector<8x8xbf16>
    %cst_102 = arith.constant dense<0.000000e+00> : vector<8x16xf32>
    %266 = tpu.matmul %265, %252, %cst_102 {dimension_numbers = #tpu.dot_dimension_numbers<[1], [0], [0], [1], [0, 0, 1, 1], [], []>} : vector<8x8xbf16>, vector<8x16xbf16>, vector<8x16xf32> -> vector<8x16xf32>
    %c0_103 = arith.constant 0 : index
    %c16_104 = arith.constant 16 : index
    %267 = vector.load %arg21[%c0_103, %c16_104] : memref<16x32xf32, #tpu.memory_space<vmem>>, vector<8x16xf32>
    tpu.vector_store %arg21[%c0_103, %c16_104], %266 {strides = array<i32>} : memref<16x32xf32, #tpu.memory_space<vmem>>, vector<8x16xf32>,
    %c1_105 = arith.constant 1 : index
    %c0_106 = arith.constant 0 : index
    %268 = vector.load %arg1[%c1_105, %c0_106] : memref<2x8xf32, #tpu.memory_space<vmem>>, vector<1x8xf32>
    %269 = vector.extract_strided_slice %222 {offsets = [8, 0], sizes = [8, 16], strides = [1, 1]} : vector<16x32xf32> to vector<8x16xf32>
    %270 = arith.truncf %269 : vector<8x16xf32> to vector<8x16xbf16>
    %271 = vector.extract_strided_slice %223 {offsets = [8, 0], sizes = [8, 16], strides = [1, 1]} : vector<16x32xf32> to vector<8x16xf32>
    %272 = arith.truncf %271 : vector<8x16xf32> to vector<8x16xbf16>
    %273 = vector.extract_strided_slice %224 {offsets = [8, 0], sizes = [8, 16], strides = [1, 1]} : vector<16x32xf32> to vector<8x16xf32>
    %274 = arith.truncf %273 : vector<8x16xf32> to vector<8x16xbf16>
    %cst_107 = arith.constant dense<0.000000e+00> : vector<8x8xf32>
    %275 = tpu.matmul %270, %272, %cst_107 {dimension_numbers = #tpu.dot_dimension_numbers<[1], [1], [0], [0], [0, 0, 1, 0], [], []>} : vector<8x16xbf16>, vector<8x16xbf16>, vector<8x8xf32> -> vector<8x8xf32>
    %276 = vector.broadcast %268 : vector<1x8xf32> to vector<8x8xf32>
    %277 = arith.addf %275, %276 : vector<8x8xf32>
    %cst_108 = arith.constant dense<0xFF800000> : vector<8xf32>
    %278 = vector.multi_reduction <maximumf>, %277, %cst_108 [1] : vector<8x8xf32> to vector<8xf32>
    %279 = vector.shape_cast %278 : vector<8xf32> to vector<8x1xf32>
    %280 = vector.broadcast %279 : vector<8x1xf32> to vector<8x8xf32>
    %281 = arith.subf %277, %280 : vector<8x8xf32>
    %282 = math.exp %281 : vector<8x8xf32>
    %cst_109 = arith.constant dense<0.000000e+00> : vector<8xf32>
    %283 = vector.multi_reduction <add>, %282, %cst_109 [1] : vector<8x8xf32> to vector<8xf32>
    %284 = vector.shape_cast %283 : vector<8xf32> to vector<8x1xf32>
    %285 = vector.broadcast %284 : vector<8x1xf32> to vector<8x8xf32>
    %286 = arith.divf %282, %285 : vector<8x8xf32>
    %287 = arith.truncf %286 : vector<8x8xf32> to vector<8x8xbf16>
    %cst_110 = arith.constant dense<0.000000e+00> : vector<8x16xf32>
    %288 = tpu.matmul %287, %274, %cst_110 {dimension_numbers = #tpu.dot_dimension_numbers<[1], [0], [0], [1], [0, 0, 1, 1], [], []>} : vector<8x8xbf16>, vector<8x16xbf16>, vector<8x16xf32> -> vector<8x16xf32>
    %c8_111 = arith.constant 8 : index
    %c0_112 = arith.constant 0 : index
    %289 = vector.load %arg21[%c8_111, %c0_112] : memref<16x32xf32, #tpu.memory_space<vmem>>, vector<8x16xf32>
    tpu.vector_store %arg21[%c8_111, %c0_112], %288 {strides = array<i32>} : memref<16x32xf32, #tpu.memory_space<vmem>>, vector<8x16xf32>,
    %290 = vector.extract_strided_slice %222 {offsets = [8, 16], sizes = [8, 16], strides = [1, 1]} : vector<16x32xf32> to vector<8x16xf32>
    %291 = arith.truncf %290 : vector<8x16xf32> to vector<8x16xbf16>
    %292 = vector.extract_strided_slice %223 {offsets = [8, 16], sizes = [8, 16], strides = [1, 1]} : vector<16x32xf32> to vector<8x16xf32>
    %293 = arith.truncf %292 : vector<8x16xf32> to vector<8x16xbf16>
    %294 = vector.extract_strided_slice %224 {offsets = [8, 16], sizes = [8, 16], strides = [1, 1]} : vector<16x32xf32> to vector<8x16xf32>
    %295 = arith.truncf %294 : vector<8x16xf32> to vector<8x16xbf16>
    %cst_113 = arith.constant dense<0.000000e+00> : vector<8x8xf32>
    %296 = tpu.matmul %291, %293, %cst_113 {dimension_numbers = #tpu.dot_dimension_numbers<[1], [1], [0], [0], [0, 0, 1, 0], [], []>} : vector<8x16xbf16>, vector<8x16xbf16>, vector<8x8xf32> -> vector<8x8xf32>
    %297 = vector.broadcast %268 : vector<1x8xf32> to vector<8x8xf32>
    %298 = arith.addf %296, %297 : vector<8x8xf32>
    %cst_114 = arith.constant dense<0xFF800000> : vector<8xf32>
    %299 = vector.multi_reduction <maximumf>, %298, %cst_114 [1] : vector<8x8xf32> to vector<8xf32>
    %300 = vector.shape_cast %299 : vector<8xf32> to vector<8x1xf32>
    %301 = vector.broadcast %300 : vector<8x1xf32> to vector<8x8xf32>
    %302 = arith.subf %298, %301 : vector<8x8xf32>
    %303 = math.exp %302 : vector<8x8xf32>
    %cst_115 = arith.constant dense<0.000000e+00> : vector<8xf32>
    %304 = vector.multi_reduction <add>, %303, %cst_115 [1] : vector<8x8xf32> to vector<8xf32>
    %305 = vector.shape_cast %304 : vector<8xf32> to vector<8x1xf32>
    %306 = vector.broadcast %305 : vector<8x1xf32> to vector<8x8xf32>
    %307 = arith.divf %303, %306 : vector<8x8xf32>
    %308 = arith.truncf %307 : vector<8x8xf32> to vector<8x8xbf16>
    %cst_116 = arith.constant dense<0.000000e+00> : vector<8x16xf32>
    %309 = tpu.matmul %308, %295, %cst_116 {dimension_numbers = #tpu.dot_dimension_numbers<[1], [0], [0], [1], [0, 0, 1, 1], [], []>} : vector<8x8xbf16>, vector<8x16xbf16>, vector<8x16xf32> -> vector<8x16xf32>
    %c8_117 = arith.constant 8 : index
    %c16_118 = arith.constant 16 : index
    %310 = vector.load %arg21[%c8_117, %c16_118] : memref<16x32xf32, #tpu.memory_space<vmem>>, vector<8x16xf32>
    tpu.vector_store %arg21[%c8_117, %c16_118], %309 {strides = array<i32>} : memref<16x32xf32, #tpu.memory_space<vmem>>, vector<8x16xf32>,
    %c0_119 = arith.constant 0 : index
    %c0_120 = arith.constant 0 : index
    %311 = vector.load %arg21[%c0_119, %c0_120] : memref<16x32xf32, #tpu.memory_space<vmem>>, vector<16x32xf32>
    %c1_121 = arith.constant 1 : index
    %c0_122 = arith.constant 0 : index
    %c0_123 = arith.constant 0 : index
    %312 = vector.load %arg7[%c1_121, %c0_122, %c0_123] : memref<2x32x32xbf16, #tpu.memory_space<vmem>>, vector<1x32x32xbf16>
    %313 = vector.shape_cast %312 : vector<1x32x32xbf16> to vector<32x32xbf16>
    %314 = arith.truncf %311 : vector<16x32xf32> to vector<16x32xbf16>
    %cst_124 = arith.constant dense<0.000000e+00> : vector<16x32xf32>
    %315 = tpu.matmul %314, %313, %cst_124 {dimension_numbers = #tpu.dot_dimension_numbers<[1], [0], [0], [1], [0, 0, 1, 1], [], []>} : vector<16x32xbf16>, vector<32x32xbf16>, vector<16x32xf32> -> vector<16x32xf32>
    %c1_125 = arith.constant 1 : index
    %c0_126 = arith.constant 0 : index
    %c0_127 = arith.constant 0 : index
    %316 = vector.load %arg8[%c1_125, %c0_126, %c0_127] : memref<2x1x32xf32, #tpu.memory_space<vmem>>, vector<1x1x32xf32>
    %317 = vector.shape_cast %316 : vector<1x1x32xf32> to vector<1x32xf32>
    %318 = vector.broadcast %317 : vector<1x32xf32> to vector<16x32xf32>
    %319 = arith.addf %315, %318 : vector<16x32xf32>
    %320 = arith.addf %319, %213 : vector<16x32xf32>
    %c1_128 = arith.constant 1 : index
    %c0_129 = arith.constant 0 : index
    %c0_130 = arith.constant 0 : index
    %321 = vector.load %arg9[%c1_128, %c0_129, %c0_130] : memref<2x2x32xf32, #tpu.memory_space<vmem>>, vector<1x2x32xf32>
    %322 = vector.shape_cast %321 : vector<1x2x32xf32> to vector<2x32xf32>
    %323 = vector.extract_strided_slice %322 {offsets = [0, 0], sizes = [1, 32], strides = [1, 1]} : vector<2x32xf32> to vector<1x32xf32>
    %324 = vector.extract_strided_slice %322 {offsets = [1, 0], sizes = [1, 32], strides = [1, 1]} : vector<2x32xf32> to vector<1x32xf32>
    %cst_131 = arith.constant dense<0.000000e+00> : vector<16xf32>
    %325 = vector.multi_reduction <add>, %320, %cst_131 [1] : vector<16x32xf32> to vector<16xf32>
    %326 = vector.shape_cast %325 : vector<16xf32> to vector<16x1xf32>
    %cst_132 = arith.constant 3.200000e+01 : f32
    %327 = vector.broadcast %cst_132 : f32 to vector<16x1xf32>
    %328 = arith.divf %326, %327 : vector<16x1xf32>
    %329 = vector.broadcast %328 : vector<16x1xf32> to vector<16x32xf32>
    %330 = arith.subf %320, %329 : vector<16x32xf32>
    %331 = arith.mulf %330, %330 : vector<16x32xf32>
    %cst_133 = arith.constant dense<0.000000e+00> : vector<16xf32>
    %332 = vector.multi_reduction <add>, %331, %cst_133 [1] : vector<16x32xf32> to vector<16xf32>
    %333 = vector.shape_cast %332 : vector<16xf32> to vector<16x1xf32>
    %cst_134 = arith.constant 3.200000e+01 : f32
    %334 = vector.broadcast %cst_134 : f32 to vector<16x1xf32>
    %335 = arith.divf %333, %334 : vector<16x1xf32>
    %336 = vector.broadcast %328 : vector<16x1xf32> to vector<16x32xf32>
    %337 = arith.subf %320, %336 : vector<16x32xf32>
    %cst_135 = arith.constant 9.99999996E-13 : f32
    %338 = vector.broadcast %cst_135 : f32 to vector<16x1xf32>
    %339 = arith.addf %335, %338 : vector<16x1xf32>
    %340 = math.rsqrt %339 : vector<16x1xf32>
    %341 = vector.broadcast %340 : vector<16x1xf32> to vector<16x32xf32>
    %342 = arith.mulf %337, %341 : vector<16x32xf32>
    %343 = vector.broadcast %323 : vector<1x32xf32> to vector<16x32xf32>
    %344 = arith.mulf %342, %343 : vector<16x32xf32>
    %345 = vector.broadcast %324 : vector<1x32xf32> to vector<16x32xf32>
    %346 = arith.addf %344, %345 : vector<16x32xf32>
    %c1_136 = arith.constant 1 : index
    %c0_137 = arith.constant 0 : index
    %c0_138 = arith.constant 0 : index
    %347 = vector.load %arg10[%c1_136, %c0_137, %c0_138] : memref<2x32x64xbf16, #tpu.memory_space<vmem>>, vector<1x32x64xbf16>
    %348 = vector.shape_cast %347 : vector<1x32x64xbf16> to vector<32x64xbf16>
    %349 = arith.truncf %346 : vector<16x32xf32> to vector<16x32xbf16>
    %cst_139 = arith.constant dense<0.000000e+00> : vector<16x64xf32>
    %350 = tpu.matmul %349, %348, %cst_139 {dimension_numbers = #tpu.dot_dimension_numbers<[1], [0], [0], [1], [0, 0, 1, 1], [], []>} : vector<16x32xbf16>, vector<32x64xbf16>, vector<16x64xf32> -> vector<16x64xf32>
    %c1_140 = arith.constant 1 : index
    %c0_141 = arith.constant 0 : index
    %c0_142 = arith.constant 0 : index
    %351 = vector.load %arg11[%c1_140, %c0_141, %c0_142] : memref<2x1x64xf32, #tpu.memory_space<vmem>>, vector<1x1x64xf32>
    %352 = vector.shape_cast %351 : vector<1x1x64xf32> to vector<1x64xf32>
    %353 = vector.broadcast %352 : vector<1x64xf32> to vector<16x64xf32>
    %354 = arith.addf %350, %353 : vector<16x64xf32>
    %355 = arith.mulf %354, %354 : vector<16x64xf32>
    %356 = arith.mulf %354, %355 : vector<16x64xf32>
    %cst_143 = arith.constant 4.471500e-02 : f32
    %357 = vector.broadcast %cst_143 : f32 to vector<16x64xf32>
    %358 = arith.mulf %357, %356 : vector<16x64xf32>
    %359 = arith.addf %354, %358 : vector<16x64xf32>
    %cst_144 = arith.constant 0.797884583 : f32
    %360 = vector.broadcast %cst_144 : f32 to vector<16x64xf32>
    %361 = arith.mulf %360, %359 : vector<16x64xf32>
    %362 = math.tanh %361 : vector<16x64xf32>
    %cst_145 = arith.constant 1.000000e+00 : f32
    %363 = vector.broadcast %cst_145 : f32 to vector<16x64xf32>
    %364 = arith.addf %363, %362 : vector<16x64xf32>
    %cst_146 = arith.constant 5.000000e-01 : f32
    %365 = vector.broadcast %cst_146 : f32 to vector<16x64xf32>
    %366 = arith.mulf %365, %364 : vector<16x64xf32>
    %367 = arith.mulf %354, %366 : vector<16x64xf32>
    %c1_147 = arith.constant 1 : index
    %c0_148 = arith.constant 0 : index
    %c0_149 = arith.constant 0 : index
    %368 = vector.load %arg12[%c1_147, %c0_148, %c0_149] : memref<2x64x32xbf16, #tpu.memory_space<vmem>>, vector<1x64x32xbf16>
    %369 = vector.shape_cast %368 : vector<1x64x32xbf16> to vector<64x32xbf16>
    %370 = arith.truncf %367 : vector<16x64xf32> to vector<16x64xbf16>
    %cst_150 = arith.constant dense<0.000000e+00> : vector<16x32xf32>
    %371 = tpu.matmul %370, %369, %cst_150 {dimension_numbers = #tpu.dot_dimension_numbers<[1], [0], [0], [1], [0, 0, 1, 1], [], []>} : vector<16x64xbf16>, vector<64x32xbf16>, vector<16x32xf32> -> vector<16x32xf32>
    %c1_151 = arith.constant 1 : index
    %c0_152 = arith.constant 0 : index
    %c0_153 = arith.constant 0 : index
    %372 = vector.load %arg13[%c1_151, %c0_152, %c0_153] : memref<2x1x32xf32, #tpu.memory_space<vmem>>, vector<1x1x32xf32>
    %373 = vector.shape_cast %372 : vector<1x1x32xf32> to vector<1x32xf32>
    %374 = vector.broadcast %373 : vector<1x32xf32> to vector<16x32xf32>
    %375 = arith.addf %371, %374 : vector<16x32xf32>
    %376 = arith.addf %375, %346 : vector<16x32xf32>
    %c1_154 = arith.constant 1 : index
    %c0_155 = arith.constant 0 : index
    %c0_156 = arith.constant 0 : index
    %377 = vector.load %arg14[%c1_154, %c0_155, %c0_156] : memref<2x2x32xf32, #tpu.memory_space<vmem>>, vector<1x2x32xf32>
    %378 = vector.shape_cast %377 : vector<1x2x32xf32> to vector<2x32xf32>
    %379 = vector.extract_strided_slice %378 {offsets = [0, 0], sizes = [1, 32], strides = [1, 1]} : vector<2x32xf32> to vector<1x32xf32>
    %380 = vector.extract_strided_slice %378 {offsets = [1, 0], sizes = [1, 32], strides = [1, 1]} : vector<2x32xf32> to vector<1x32xf32>
    %cst_157 = arith.constant dense<0.000000e+00> : vector<16xf32>
    %381 = vector.multi_reduction <add>, %376, %cst_157 [1] : vector<16x32xf32> to vector<16xf32>
    %382 = vector.shape_cast %381 : vector<16xf32> to vector<16x1xf32>
    %cst_158 = arith.constant 3.200000e+01 : f32
    %383 = vector.broadcast %cst_158 : f32 to vector<16x1xf32>
    %384 = arith.divf %382, %383 : vector<16x1xf32>
    %385 = vector.broadcast %384 : vector<16x1xf32> to vector<16x32xf32>
    %386 = arith.subf %376, %385 : vector<16x32xf32>
    %387 = arith.mulf %386, %386 : vector<16x32xf32>
    %cst_159 = arith.constant dense<0.000000e+00> : vector<16xf32>
    %388 = vector.multi_reduction <add>, %387, %cst_159 [1] : vector<16x32xf32> to vector<16xf32>
    %389 = vector.shape_cast %388 : vector<16xf32> to vector<16x1xf32>
    %cst_160 = arith.constant 3.200000e+01 : f32
    %390 = vector.broadcast %cst_160 : f32 to vector<16x1xf32>
    %391 = arith.divf %389, %390 : vector<16x1xf32>
    %392 = vector.broadcast %384 : vector<16x1xf32> to vector<16x32xf32>
    %393 = arith.subf %376, %392 : vector<16x32xf32>
    %cst_161 = arith.constant 9.99999996E-13 : f32
    %394 = vector.broadcast %cst_161 : f32 to vector<16x1xf32>
    %395 = arith.addf %391, %394 : vector<16x1xf32>
    %396 = math.rsqrt %395 : vector<16x1xf32>
    %397 = vector.broadcast %396 : vector<16x1xf32> to vector<16x32xf32>
    %398 = arith.mulf %393, %397 : vector<16x32xf32>
    %399 = vector.broadcast %379 : vector<1x32xf32> to vector<16x32xf32>
    %400 = arith.mulf %398, %399 : vector<16x32xf32>
    %401 = vector.broadcast %380 : vector<1x32xf32> to vector<16x32xf32>
    %402 = arith.addf %400, %401 : vector<16x32xf32>
    %403 = vector.extract_strided_slice %402 {offsets = [0, 0], sizes = [1, 32], strides = [1, 1]} : vector<16x32xf32> to vector<1x32xf32>
    %404 = vector.extract_strided_slice %402 {offsets = [8, 0], sizes = [1, 32], strides = [1, 1]} : vector<16x32xf32> to vector<1x32xf32>
    %405 = tpu.concatenate %403, %404 in 0 : vector<1x32xf32>, vector<1x32xf32> -> vector<2x32xf32>
    %c0_162 = arith.constant 0 : index
    %c0_163 = arith.constant 0 : index
    %406 = vector.load %arg15[%c0_162, %c0_163] : memref<32x32xbf16, #tpu.memory_space<vmem>>, vector<32x32xbf16>
    %407 = arith.truncf %405 : vector<2x32xf32> to vector<2x32xbf16>
    %cst_164 = arith.constant dense<0.000000e+00> : vector<2x32xf32>
    %408 = tpu.matmul %407, %406, %cst_164 {dimension_numbers = #tpu.dot_dimension_numbers<[1], [0], [0], [1], [0, 0, 1, 1], [], []>} : vector<2x32xbf16>, vector<32x32xbf16>, vector<2x32xf32> -> vector<2x32xf32>
    %c0_165 = arith.constant 0 : index
    %c0_166 = arith.constant 0 : index
    %409 = vector.load %arg16[%c0_165, %c0_166] : memref<1x32xf32, #tpu.memory_space<vmem>>, vector<1x32xf32>
    %410 = vector.broadcast %409 : vector<1x32xf32> to vector<2x32xf32>
    %411 = arith.addf %408, %410 : vector<2x32xf32>
    %412 = math.tanh %411 : vector<2x32xf32>
    %c0_167 = arith.constant 0 : index
    %c0_168 = arith.constant 0 : index
    %413 = vector.load %arg17[%c0_167, %c0_168] : memref<32x128xbf16, #tpu.memory_space<vmem>>, vector<32x128xbf16>
    %414 = arith.truncf %412 : vector<2x32xf32> to vector<2x32xbf16>
    %cst_169 = arith.constant dense<0.000000e+00> : vector<2x128xf32>
    %415 = tpu.matmul %414, %413, %cst_169 {dimension_numbers = #tpu.dot_dimension_numbers<[1], [0], [0], [1], [0, 0, 1, 1], [], []>} : vector<2x32xbf16>, vector<32x128xbf16>, vector<2x128xf32> -> vector<2x128xf32>
    %c0_170 = arith.constant 0 : index
    %c0_171 = arith.constant 0 : index
    %416 = vector.load %arg18[%c0_170, %c0_171] : memref<1x128xf32, #tpu.memory_space<vmem>>, vector<1x128xf32>
    %417 = vector.broadcast %416 : vector<1x128xf32> to vector<2x128xf32>
    %418 = arith.addf %415, %417 : vector<2x128xf32>
    %c0_172 = arith.constant 0 : index
    %c0_173 = arith.constant 0 : index
    %419 = vector.load %arg19[%c0_172, %c0_173] : memref<2x128xf32, #tpu.memory_space<vmem>>, vector<2x128xf32>
    tpu.vector_store %arg19[%c0_172, %c0_173], %418 {strides = array<i32>} : memref<2x128xf32, #tpu.memory_space<vmem>>, vector<2x128xf32>,
    %420 = tpu.iota {dimensions = array<i32: 1>} : vector<2x128xi32>
    %c2_i32 = arith.constant 2 : i32
    %421 = vector.broadcast %c2_i32 : i32 to vector<2x128xi32>
    %422 = arith.cmpi slt, %420, %421 : vector<2x128xi32>
    %cst_174 = arith.constant -1.000000e+09 : f32
    %423 = vector.broadcast %cst_174 : f32 to vector<2x128xf32>
    %424 = arith.select %422, %418, %423 : vector<2x128xi1>, vector<2x128xf32>
    %c0_175 = arith.constant 0 : index
    %c0_176 = arith.constant 0 : index
    %425 = vector.load %arg2[%c0_175, %c0_176] : memref<2x1xi32, #tpu.memory_space<vmem>>, vector<2x1xi32>
    %426 = vector.broadcast %425 : vector<2x1xi32> to vector<2x128xi32>
    %427 = arith.cmpi eq, %420, %426 : vector<2x128xi32>
    %428 = arith.extui %427 : vector<2x128xi1> to vector<2x128xi32>
    %429 = arith.sitofp %428 : vector<2x128xi32> to vector<2x128xf32>
    %cst_177 = arith.constant dense<0xFF800000> : vector<2xf32>
    %430 = vector.multi_reduction <maximumf>, %424, %cst_177 [1] : vector<2x128xf32> to vector<2xf32>
    %431 = vector.shape_cast %430 : vector<2xf32> to vector<2x1xf32>
    %432 = vector.broadcast %431 : vector<2x1xf32> to vector<2x128xf32>
    %433 = arith.subf %424, %432 : vector<2x128xf32>
    %434 = math.exp %433 : vector<2x128xf32>
    %cst_178 = arith.constant dense<0.000000e+00> : vector<2xf32>
    %435 = vector.multi_reduction <add>, %434, %cst_178 [1] : vector<2x128xf32> to vector<2xf32>
    %436 = vector.shape_cast %435 : vector<2xf32> to vector<2x1xf32>
    %437 = math.log %436 : vector<2x1xf32>
    %438 = arith.addf %437, %431 : vector<2x1xf32>
    %439 = vector.broadcast %438 : vector<2x1xf32> to vector<2x128xf32>
    %440 = arith.subf %424, %439 : vector<2x128xf32>
    %441 = arith.mulf %429, %440 : vector<2x128xf32>
    %cst_179 = arith.constant dense<0.000000e+00> : vector<2xf32>
    %442 = vector.multi_reduction <add>, %441, %cst_179 [1] : vector<2x128xf32> to vector<2xf32>
    %443 = vector.shape_cast %442 : vector<2xf32> to vector<2x1xf32>
    %cst_180 = arith.constant 0.000000e+00 : f32
    %444 = vector.broadcast %cst_180 : f32 to vector<2x1xf32>
    %445 = arith.subf %444, %443 : vector<2x1xf32>
    %c0_181 = arith.constant 0 : index
    %c0_182 = arith.constant 0 : index
    %446 = vector.load %arg3[%c0_181, %c0_182] : memref<1x128xf32, #tpu.memory_space<vmem>>, vector<1x128xf32>
    %447 = vector.broadcast %446 : vector<1x128xf32> to vector<2x128xf32>
    %448 = arith.mulf %429, %447 : vector<2x128xf32>
    %cst_183 = arith.constant dense<0.000000e+00> : vector<2xf32>
    %449 = vector.multi_reduction <add>, %448, %cst_183 [1] : vector<2x128xf32> to vector<2xf32>
    %450 = vector.shape_cast %449 : vector<2xf32> to vector<2x1xf32>
    %451 = arith.mulf %445, %450 : vector<2x1xf32>
    %cst_184 = arith.constant dense<0.000000e+00> : vector<1xf32>
    %452 = vector.multi_reduction <add>, %451, %cst_184 [0] : vector<2x1xf32> to vector<1xf32>
    %453 = vector.shape_cast %452 : vector<1xf32> to vector<1x1xf32>
    %cst_185 = arith.constant dense<0.000000e+00> : vector<1xf32>
    %454 = vector.multi_reduction <add>, %450, %cst_185 [0] : vector<2x1xf32> to vector<1xf32>
    %455 = vector.shape_cast %454 : vector<1xf32> to vector<1x1xf32>
    %cst_186 = arith.constant 0.000000e+00 : f32
    %456 = vector.broadcast %cst_186 : f32 to vector<1x1xf32>
    %457 = arith.cmpf ogt, %455, %456 : vector<1x1xf32>
    %cst_187 = arith.constant 1.000000e+00 : f32
    %458 = vector.broadcast %cst_187 : f32 to vector<1x1xf32>
    %459 = arith.select %457, %455, %458 : vector<1x1xi1>, vector<1x1xf32>
    %460 = arith.divf %453, %459 : vector<1x1xf32>
    %c0_188 = arith.constant 0 : index
    %c0_189 = arith.constant 0 : index
    %461 = vector.load %arg20[%c0_188, %c0_189] : memref<1x1xf32, #tpu.memory_space<vmem>>, vector<1x1xf32>
    tpu.vector_store %arg20[%c0_188, %c0_189], %460 {strides = array<i32>} : memref<1x1xf32, #tpu.memory_space<vmem>>, vector<1x1xf32>,
    return
  }
}

</mosaic_0001>

<bundles_post_ra>
// kernel: weighted_hatebert_forward.1
= control target key start
LH: loop header
LB: loop body
LE: loop exit
PB: predicated region body
PF: predicated region fallthrough
CT: control target
= control target key end

     0   :  { %s3118_s0 = inlined_call_operand.vmem [shape: f32[16,32], index: 0, kind: input, shape index: {}]   ;;  %s3119_s1 = inlined_call_operand.vmem [shape: f32[2,8], index: 1, kind: input, shape index: {}]   ;;  %s3120_s2 = inlined_call_operand.vmem [shape: s32[2,1], index: 2, kind: input, shape index: {}]   ;;  %s3121_s3 = inlined_call_operand.vmem [shape: f32[1,128], index: 3, kind: input, shape index: {}]   ;;  %s3122_s4 = inlined_call_operand.vmem [shape: f32[2,32], index: 4, kind: input, shape index: {}]   ;;  %s3123_s5 = inlined_call_operand.vmem [shape: bf16[2,32,96], index: 5, kind: input, shape index: {}]   ;;  %s3124_s6 = inlined_call_operand.vmem [shape: f32[2,1,96], index: 6, kind: input, shape index: {}]   ;;  %s3125_s7 = inlined_call_operand.vmem [shape: bf16[2,32,32], index: 7, kind: input, shape index: {}]   ;;  %s3126_s8 = inlined_call_operand.vmem [shape: f32[2,1,32], index: 8, kind: input, shape index: {}]   ;;  %s3127_s9 = inlined_call_operand.vmem [shape: f32[2,2,32], index: 9, kind: input, shape index: {}]   ;;  %s3128_s10 = inlined_call_operand.vmem [shape: bf16[2,32,64], index: 10, kind: input, shape index: {}]   ;;  %s3129_s11 = inlined_call_operand.vmem [shape: f32[2,1,64], index: 11, kind: input, shape index: {}]   ;;  %s3130_s12 = inlined_call_operand.vmem [shape: bf16[2,64,32], index: 12, kind: input, shape index: {}]   ;;  %s3131_s13 = inlined_call_operand.vmem [shape: f32[2,1,32], index: 13, kind: input, shape index: {}]   ;;  %s3132_s14 = inlined_call_operand.vmem [shape: f32[2,2,32], index: 14, kind: input, shape index: {}]   ;;  %s3133_s15 = inlined_call_operand.vmem [shape: bf16[32,32], index: 15, kind: input, shape index: {}]   ;;  %s3134_s16 = inlined_call_operand.vmem [shape: f32[1,32], index: 16, kind: input, shape index: {}]   ;;  %s3135_s17 = inlined_call_operand.vmem [shape: bf16[32,128], index: 17, kind: input, shape index: {}]   ;;  %s3136_s18 = inlined_call_operand.vmem [shape: f32[1,128], index: 18, kind: input, shape index: {}]   ;;  %s3137_s19 = inlined_call_operand.hbm [shape: f32[2,128], index: 19, kind: output, shape index: {0}]   ;;  %s3138_s20 = inlined_call_operand.hbm [shape: f32[1,1], index: 20, kind: output, shape index: {1}]  }
   0x1   :  { %3142 = sst [smem:[#allocation9_spill]] %s3118_s0 }
   0x2   :  { %3143 = sst [smem:[#allocation10_spill]] %s3119_s1 }
   0x3   :  { %3144 = sst [smem:[#allocation11_spill]] %s3120_s2 }
   0x4   :  { %3145 = sst [smem:[#allocation12_spill]] %s3121_s3 }
   0x5   :  { %3146 = sst [smem:[#allocation13_spill]] %s3122_s4 }
   0x6   :  { %26 = vsyncpa [#allocation4], 0  ;;  %s3147_s23 = sld [smem:[#allocation9_spill]]  ;;  %vm71_vm0 = vcmask 261120  }
   0xc   :  { %v67_v0 = vld [vmem:[%s3147_s23] sm:$0xff]  ;;  %v68_v1 = vld [vmem:[%s3147_s23 + $0x8] sm:$0xff] }
   0xd   :  { %v72_v2 = vsel %vm71_vm0, %v67_v0, 0.0  ;;  %v75_v3 = vsel %vm71_vm0, %v68_v1, 0.0 }
   0xe   :  { %73 = vadd.xlane.f32.xlu0 %v72_v2 }
  0x12   :  { %76 = vadd.xlane.f32.xlu0 %v75_v3 }
  0x13   :  { %27 = vsyncpa [#allocation6], 0  ;;  %v2417_v14 = vld [vmem:[%s3123_s5] sm:$0xff]   ;;  %v2557_v15 = vmov 0.0   ;;  %v2418_v16 = vld [vmem:[%s3123_s5 + $0x8] sm:$0xff]   ;;  %vm2558_vm1 = vmmov 0  }
  0x14   :  { %2221 = vmatprep.subr.bf16.mxu0 %v2557_v15  ;;  %2229 = vmatprep.subr.bf16.mxu1 %v2557_v15  ;;  %s3148_s29 = sld [smem:[#allocation13_spill]]  ;;  %v2063_v34 = vld [vmem:[%s3124_s6] ss:$0 sm:$0xff]  ;;  %s2559_s22 = smov 80   ;;  %vm188_vm2 = vcmask 130048   ;;  %vm235_vm3 = vcmask 64512  }
  0x15   :  { %2222 = vmatpush3.bf16.msra.mxu0 %v2417_v14  ;;  %2225 = vmatprep.mubr.msk.bf16.mxu0 %vm2558_vm1, %v2557_v15  ;;  %s2560_s23 = smov 96   ;;  %s2561_s24 = smov 112   ;;  %vm253_vm4 = vcmask 1043456   ;;  %vm412_vm5 = vcmask 261248   ;;  %vm882_vm6 = vcmask 523264   ;;  %vm1833_vm7 = vcmask 1040384  }
  0x16   :  { %2223 = vmatprep.subr.bf16.mxu0 %v2557_v15  ;;  %2231 = vmatprep.mubr.msk.bf16.mxu1 %vm2558_vm1, %v2557_v15  ;;  %s3149_s3 = sld [smem:[#allocation10_spill]]  ;;  %s2562_s28 = smov 48   ;;  %vm1982_vm9 = vcmask 1041408  }
  0x17   :  { %s2563_s4 = smov 64   ;;  %s3151_s26 = sld [smem:[#allocation12_spill]] }
  0x18   :  { %s2566_s27 = smov [#allocation3]  }
  0x19   :  { %2224 = vmatpush3.bf16.msra.mxu0 %v2418_v16  ;;  %s2039_s30 = sshll.u32 %s2566_s27, 4  ;;  %s2040_s30 = int_to_ptr.vmem [resolvable:$true] %s2039_s30 }
  0x1a   :  { %2235 = vmatprep.subr.bf16.mxu0 %v2557_v15  ;;  %v2061_v25 = vld [vmem:[%s3148_s29] ss:$0 sm:$0xff]  ;;  %v2062_v29 = vld [vmem:[%s3148_s29 + $0x1] ss:$0 sm:$0xff]  ;;  %s2564_s29 = smov 16   ;;  %s2509_s0 = scalar_lea.vmem %s2040_s30, 32 }
  0x1b   :  { %p2510_p0 = scmp.ne.s32.totalorder %s2040_s30, %s2509_s0  ;;  %p2514_p1 = scmp.lt.s32.totalorder %s2040_s30, %s2040_s30 }
  0x1c   :  { %v2756_v53 = vld [vmem:[%s3149_s3] ss:$0 sm:$0xff]  ;;  %v2765_v2 = vld [vmem:[%s3149_s3 + $0x1] ss:$0 sm:$0xff]  ;;  %p2515_p2 = scmp.lt.s32.totalorder %s2509_s0, %s2509_s0 }
  0x1e   :  { %p2516_p3 = por %p2515_p2, %p2514_p1 }
  0x20   :  { %p2517_p4 = pnand %p2516_p3, %p2510_p0 }
  0x9b   :  { %v74_v4 = vpop.xlane.xlu0 %73 }
  0x9c   :  { %v79_v5 = vmul.f32 0.03125, %v74_v4 }
  0x9e   :  { %v81_v6 = vsub.f32 %v67_v0, %v79_v5 }
  0x9f   :  { %v77_v7 = vpop.xlane.xlu0 %76 }
  0xa0   :  { %v80_v8 = vmul.f32 0.03125, %v77_v7  ;;  %v83_v9 = vmul.f32 %v81_v6, %v81_v6 }
  0xa2   :  { %v82_v10 = vsub.f32 %v68_v1, %v80_v8  ;;  %v85_v11 = vsel %vm71_vm0, %v83_v9, 0.0 }
  0xa3   :  { %86 = vadd.xlane.f32.xlu1 %v85_v11 }
  0xa4   :  { %v84_v12 = vmul.f32 %v82_v10, %v82_v10 }
  0xa6   :  { %v88_v13 = vsel %vm71_vm0, %v84_v12, 0.0 }
  0xa7   :  { %89 = vadd.xlane.f32.xlu1 %v88_v13 }
 0x130   :  { %v87_v17 = vpop.xlane.xlu1 %86 }
 0x131   :  { %v91_v18 = vmul.f32 0.03125, %v87_v17 }
 0x133   :  { %v93_v19 = vadd.f32 1e-12, %v91_v18 }
 0x134   :  { %v90_v20 = vpop.xlane.xlu1 %89 }
 0x135   :  { %2441 = vrsqrt.f32 %v93_v19  ;;  %v92_v21 = vmul.f32 0.03125, %v90_v20 }
 0x137   :  { %v94_v22 = vadd.f32 1e-12, %v92_v21 }
 0x139   :  { %2443 = vrsqrt.f32 %v94_v22 }
 0x13f   :  { %v2442_v23 = vpop.eup %2441 }
 0x140   :  { %v97_v24 = vmul.f32 %v2442_v23, %v81_v6 }
 0x142   :  { %v103_v28 = vmul.f32 %v2061_v25, %v97_v24 }
 0x143   :  { %v2444_v26 = vpop.eup %2443 }
 0x144   :  { %v98_v27 = vmul.f32 %v2444_v26, %v82_v10  ;;  %v2703_v31 = vadd.f32 %v2062_v29, %v103_v28 }
 0x146   :  { %v104_v30 = vmul.f32 %v2061_v25, %v98_v27 }
 0x148   :  { %v2705_v32 = vadd.f32 %v2062_v29, %v104_v30 }
 0x14a   :  { %v115_v33 = vpack.c.bf16 %v2705_v32, %v2703_v31 }
 0x14c   :  { %2226 = vmatmul.mubr.msk.bf16.vlgmr.msra.gmra.mrb[0].mxu0 %vm71_vm0, %v115_v33 }
 0x14d   :  { %2237 = vmatprep.mubr.msk.bf16.mxu0 %vm2558_vm1, %v2557_v15 }
 0x21f   :  { %v172_v35 = vpop.f32.mrb[0].mxu0 }
 0x220   :  { %v173_v36 = vadd.f32 %v2063_v34, %v172_v35  ;;  %v2227_v37 = vpop.f32.mrb[1].mxu0 }
 0x221   :  { %v175_v38 = vpop.f32.mrb[2].mxu0 }
 0x222   :  { %v2715_v39 = vpack.c.bf16 %v173_v36, %v173_v36  ;;  %v176_v40 = vadd.f32 %v2063_v34, %v175_v38  ;;  %v2228_v41 = vpop.f32.mrb[3].mxu0 }
 0x224   :  { %300 = vrot.lane.b32.xlu1 %v2715_v39, %s2559_s22  ;;  %186 = vrot.lane.b32.xlu0 %v2715_v39, %s2560_s23  ;;  %v2721_v42 = vpack.c.bf16 %v176_v40, %v176_v40 }
 0x228   :  { %298 = vrot.lane.b32.xlu1 %v2715_v39, %s2561_s24  ;;  %532 = vrot.lane.b32.xlu0 %v2721_v42, %s2559_s22 }
 0x22c   :  { %421 = vrot.lane.b32.xlu1 %v2721_v42, %s2560_s23 }
 0x230   :  { %530 = vrot.lane.b32.xlu1 %v2721_v42, %s2561_s24 }
 0x296   :  { %v187_v43 = vpop.permute.xlu0 %186  ;;  %v301_v45 = vpop.permute.xlu1 %300 }
 0x297   :  { %v193_v44 = vsel %vm188_vm2, %v187_v43, 0  ;;  %v306_v47 = vsel %vm188_vm2, %v301_v45, 0 }
 0x298   :  { %2230 = vmatpush3.bf16.xpose.msra.mxu1 %v193_v44 }
 0x299   :  { %2241 = vmatprep.subr.bf16.mxu1 %v2557_v15 }
 0x29a   :  { %v299_v46 = vpop.permute.xlu1 %298  ;;  %v533_v50 = vpop.permute.xlu0 %532 }
 0x29b   :  { %v538_v51 = vsel %vm188_vm2, %v533_v50, 0 }
 0x29e   :  { %v422_v48 = vpop.permute.xlu1 %421 }
 0x29f   :  { %2232 = vmatmul.mubr.msk.bf16.vlgmr.msra.gmra.mrb[0].mxu1 %vm188_vm2, %v2715_v39  ;;  %v427_v49 = vsel %vm188_vm2, %v422_v48, 0 }
 0x2a0   :  { %2242 = vmatpush3.bf16.xpose.msra.mxu1 %v306_v47  ;;  %2243 = vmatprep.mubr.msk.bf16.mxu1 %vm2558_vm1, %v2557_v15 }
 0x2a1   :  { %2253 = vmatprep.subr.bf16.mxu1 %v2557_v15 }
 0x2a2   :  { %v531_v52 = vpop.permute.xlu1 %530 }
 0x2a7   :  { %2244 = vmatmul.mubr.msk.bf16.vlgmr.msra.gmra.mrb[4].mxu1 %vm188_vm2, %v299_v46 }
 0x2a8   :  { %2254 = vmatpush3.bf16.xpose.msra.mxu1 %v427_v49  ;;  %2255 = vmatprep.mubr.msk.bf16.mxu1 %vm2558_vm1, %v2557_v15 }
 0x2a9   :  { %2265 = vmatprep.subr.bf16.mxu1 %v2557_v15 }
 0x2af   :  { %2256 = vmatmul.mubr.msk.bf16.vlgmr.msra.gmra.mrb[8].mxu1 %vm188_vm2, %v2721_v42 }
 0x2b0   :  { %2266 = vmatpush3.bf16.xpose.msra.mxu1 %v538_v51  ;;  %2267 = vmatprep.mubr.msk.bf16.mxu1 %vm2558_vm1, %v2557_v15 }
 0x2b1   :  { %2277 = vmatprep.subr.bf16.mxu1 %v2557_v15 }
 0x2b7   :  { %2268 = vmatmul.mubr.msk.bf16.vlgmr.msra.gmra.mrb[12].mxu1 %vm188_vm2, %v531_v52 }
 0x2b8   :  { %2281 = vmatprep.mubr.msk.bf16.mxu1 %vm2558_vm1, %v2557_v15 }
 0x372   :  { %v229_v54 = vpop.f32.mrb[0].mxu1 }
 0x373   :  { %v230_v55 = vadd.f32 %v2756_v53, %v229_v54  ;;  %v2233_v56 = vpop.f32.mrb[1].mxu1 }
 0x374   :  { %v232_v57 = vpop.f32.mrb[2].mxu1 }
 0x375   :  { %v2234_v58 = vpop.f32.mrb[3].mxu1  ;;  %v236_v59 = vsel %vm235_vm3, %v230_v55, -inf }
 0x376   :  { %237 = vmax.xlane.f32.xlu0 %v236_v59 }
 0x37a   :  { %v342_v60 = vpop.f32.mrb[4].mxu1 }
 0x37b   :  { %v343_v61 = vadd.f32 %v2756_v53, %v342_v60  ;;  %v2245_v62 = vpop.f32.mrb[5].mxu1 }
 0x37c   :  { %v345_v63 = vpop.f32.mrb[6].mxu1 }
 0x37d   :  { %v2246_v0 = vpop.f32.mrb[7].mxu1  ;;  %v348_v1 = vsel %vm235_vm3, %v343_v61, -inf }
 0x37e   :  { %349 = vmax.xlane.f32.xlu1 %v348_v1 }
 0x382   :  { %v463_v3 = vpop.f32.mrb[8].mxu1 }
 0x383   :  { %v464_v4 = vadd.f32 %v2765_v2, %v463_v3  ;;  %v2257_v5 = vpop.f32.mrb[9].mxu1 }
 0x384   :  { %v466_v6 = vpop.f32.mrb[10].mxu1 }
 0x385   :  { %v2258_v7 = vpop.f32.mrb[11].mxu1  ;;  %v469_v8 = vsel %vm235_vm3, %v464_v4, -inf }
 0x386   :  { %470 = vmax.xlane.f32.xlu0 %v469_v8 }
 0x38a   :  { %v574_v9 = vpop.f32.mrb[12].mxu1 }
 0x38b   :  { %v575_v10 = vadd.f32 %v2765_v2, %v574_v9  ;;  %v2269_v11 = vpop.f32.mrb[13].mxu1 }
 0x38c   :  { %v577_v12 = vpop.f32.mrb[14].mxu1 }
 0x38d   :  { %v2270_v13 = vpop.f32.mrb[15].mxu1  ;;  %v580_v14 = vsel %vm235_vm3, %v575_v10, -inf  ;;  %v2419_v12 = vld [vmem:[%s3125_s7] sm:$0xff]  }
 0x38e   :  { %581 = vmax.xlane.f32.xlu0 %v580_v14  ;;  %2278 = vmatpush3.bf16.msra.mxu1 %v2419_v12  ;;  %v2420_v13 = vld [vmem:[%s3125_s7 + $0x8] sm:$0xff]  }
 0x38f   :  { %2279 = vmatprep.subr.bf16.mxu1 %v2557_v15 }
 0x392   :  { %2280 = vmatpush3.bf16.msra.mxu1 %v2420_v13 }
 0x393   :  { %2293 = vmatprep.subr.bf16.mxu1 %v2557_v15 }
 0x403   :  { %v238_v16 = vpop.xlane.xlu0 %237 }
 0x404   :  { %v239_v17 = vsub.f32 %v230_v55, %v238_v16 }
 0x406   :  { %v240_v18 = vmul.f32 1.442695, %v239_v17 }
 0x408   :  { %2445 = vpow2.f32 %v240_v18 }
 0x40b   :  { %v350_v19 = vpop.xlane.xlu1 %349 }
 0x40c   :  { %v351_v20 = vsub.f32 %v343_v61, %v350_v19 }
 0x40e   :  { %v352_v21 = vmul.f32 1.442695, %v351_v20 }
 0x410   :  { %2447 = vpow2.f32 %v352_v21 }
 0x412   :  { %v2446_v22 = vpop.eup %2445 }
 0x413   :  { %v471_v23 = vpop.xlane.xlu0 %470  ;;  %v242_v24 = vsel %vm235_vm3, %v2446_v22, 0.0 }
 0x414   :  { %v472_v25 = vsub.f32 %v464_v4, %v471_v23  ;;  %243 = vadd.xlane.f32.xlu0 %v242_v24  ;;  %v2077_v24 = vld [vmem:[%s3126_s8] ss:$0 sm:$0xff] }
 0x416   :  { %v473_v26 = vmul.f32 1.442695, %v472_v25 }
 0x418   :  { %2449 = vpow2.f32 %v473_v26 }
 0x41a   :  { %v2448_v27 = vpop.eup %2447 }
 0x41b   :  { %v354_v28 = vsel %vm235_vm3, %v2448_v27, 0.0  ;;  %v582_v33 = vpop.xlane.xlu0 %581 }
 0x41c   :  { %355 = vadd.xlane.f32.xlu1 %v354_v28  ;;  %v583_v34 = vsub.f32 %v575_v10, %v582_v33 }
 0x41e   :  { %v584_v35 = vmul.f32 1.442695, %v583_v34 }
 0x420   :  { %2451 = vpow2.f32 %v584_v35 }
 0x422   :  { %v2450_v29 = vpop.eup %2449 }
 0x423   :  { %v475_v30 = vsel %vm235_vm3, %v2450_v29, 0.0 }
 0x424   :  { %476 = vadd.xlane.f32.xlu0 %v475_v30 }
 0x42a   :  { %v2452_v36 = vpop.eup %2451 }
 0x42b   :  { %v586_v37 = vsel %vm235_vm3, %v2452_v36, 0.0 }
 0x42d   :  { %360 = vrot.lane.b32.xlu1 %v2715_v39, %s2562_s28 }
 0x431   :  { %481 = vrot.lane.b32.xlu1 %v2721_v42, %s2563_s4 }
 0x43a   :  { %248 = vrot.lane.b32.xlu0 %v2715_v39, %s2563_s4 }
 0x455   :  { %587 = vadd.xlane.f32.xlu1 %v586_v37 }
 0x466   :  { %592 = vrot.lane.b32.xlu1 %v2721_v42, %s2562_s28 }
 0x4a1   :  { %v244_v38 = vpop.xlane.xlu0 %243 }
 0x4a2   :  { %2453 = vrcp.f32 %v244_v38 }
 0x4a9   :  { %v356_v40 = vpop.xlane.xlu1 %355 }
 0x4aa   :  { %2455 = vrcp.f32 %v356_v40 }
 0x4ac   :  { %v2454_v41 = vpop.eup %2453 }
 0x4ad   :  { %v246_v44 = vmul.f32 %v2454_v41, %v2446_v22  ;;  %v361_v46 = vpop.permute.xlu1 %360 }
 0x4ae   :  { %v366_v42 = vsel %vm253_vm4, %v361_v46, 0 }
 0x4af   :  { %v247_v47 = vpack.c.bf16 %v246_v44, %v246_v44 }
 0x4b1   :  { %v477_v43 = vpop.xlane.xlu0 %476  ;;  %v482_v50 = vpop.permute.xlu1 %481 }
 0x4b2   :  { %2457 = vrcp.f32 %v477_v43  ;;  %v487_v54 = vsel %vm253_vm4, %v482_v50, 0  ;;  %v744_v50 = vlaneseq }
 0x4b4   :  { %v2456_v48 = vpop.eup %2455 }
 0x4b5   :  { %v249_v39 = vpop.permute.xlu0 %248  ;;  %v358_v49 = vmul.f32 %v2456_v48, %v2448_v27 }
 0x4b6   :  { %v255_v45 = vsel %vm253_vm4, %v249_v39, 0 }
 0x4b7   :  { %2236 = vmatpush3.bf16.msra.mxu0 %v255_v45  ;;  %v359_v51 = vpack.c.bf16 %v358_v49, %v358_v49 }
 0x4b8   :  { %2247 = vmatprep.subr.bf16.mxu0 %v2557_v15 }
 0x4ba   :  { %2238 = vmatmul.mubr.msk.bf16.vlgmr.msra.gmra.mrb[4].mxu0 %vm235_vm3, %v247_v47  ;;  %v2422_v47 = vld [vmem:[%s3128_s10 + $0x8] sm:$0xff]  }
 0x4bb   :  { %2248 = vmatpush3.bf16.msra.mxu0 %v366_v42  ;;  %2249 = vmatprep.mubr.msk.bf16.mxu0 %vm2558_vm1, %v2557_v15 }
 0x4bc   :  { %2259 = vmatprep.subr.bf16.mxu0 %v2557_v15  ;;  %v2458_v52 = vpop.eup %2457 }
 0x4bd   :  { %v479_v55 = vmul.f32 %v2458_v52, %v2450_v29 }
 0x4bf   :  { %v480_v56 = vpack.c.bf16 %v479_v55, %v479_v55  ;;  %v745_v55 = vshrl.u32 %v744_v50, 7 }
 0x4c2   :  { %2250 = vmatmul.mubr.msk.bf16.vlgmr.msra.gmra.mrb[8].mxu0 %vm235_vm3, %v359_v51 }
 0x4c3   :  { %2260 = vmatpush3.bf16.msra.mxu0 %v487_v54  ;;  %2261 = vmatprep.mubr.msk.bf16.mxu0 %vm2558_vm1, %v2557_v15 }
 0x4c4   :  { %2271 = vmatprep.subr.bf16.mxu0 %v2557_v15 }
 0x4ca   :  { %2262 = vmatmul.mubr.msk.bf16.vlgmr.msra.gmra.mrb[12].mxu0 %vm235_vm3, %v480_v56  ;;  %v2838_v56 = vsub.s32 0, %v745_v55 }
 0x4cb   :  { %2273 = vmatprep.mubr.msk.bf16.mxu0 %vm2558_vm1, %v2557_v15 }
 0x4e2   :  { %v588_v57 = vpop.xlane.xlu1 %587 }
 0x4e3   :  { %2459 = vrcp.f32 %v588_v57  ;;  %v717_v57 = vld [vmem:[%s3127_s9] sm:$0x3] }
 0x4e6   :  { %v593_v58 = vpop.permute.xlu1 %592 }
 0x4e7   :  { %v598_v59 = vsel %vm253_vm4, %v593_v58, 0 }
 0x4e8   :  { %2272 = vmatpush3.bf16.msra.mxu0 %v598_v59  ;;  %v747_v59 = vrot.slane %v717_v57, %v2838_v56 }
 0x4e9   :  { %2285 = vmatprep.subr.bf16.mxu0 %v2557_v15 }
 0x4ed   :  { %v2460_v60 = vpop.eup %2459 }
 0x4ee   :  { %v590_v61 = vmul.f32 %v2460_v60, %v2452_v36 }
 0x4f0   :  { %v591_v62 = vpack.c.bf16 %v590_v61, %v590_v61  ;;  %v2844_v61 = vsub.s32 1, %v745_v55 }
 0x4f2   :  { %2274 = vmatmul.mubr.msk.bf16.vlgmr.msra.gmra.mrb[16].mxu0 %vm235_vm3, %v591_v62 }
 0x4f3   :  { %2289 = vmatprep.mubr.msk.bf16.mxu0 %vm2558_vm1, %v2557_v15 }
 0x58d   :  { %v291_v63 = vpop.f32.mrb[4].mxu0 }
 0x58e   :  { %297 = vst.msk [vmem:[#allocation2] sm:$0xff] %vm188_vm2, %v291_v63  ;;  %v2239_v0 = vpop.f32.mrb[5].mxu0 }
 0x58f   :  { %v294_v1 = vpop.f32.mrb[6].mxu0 }
 0x590   :  { %v2240_v3 = vpop.f32.mrb[7].mxu0  ;;  %v753_v1 = vrot.slane %v717_v57, %v2844_v61 }
 0x595   :  { %v402_v4 = vpop.f32.mrb[8].mxu0 }
 0x596   :  { %409 = vrot.lane.b32.xlu0 %v402_v4, %s2564_s29  ;;  %v2251_v5 = vpop.f32.mrb[9].mxu0 }
 0x597   :  { %v405_v6 = vpop.f32.mrb[10].mxu0 }
 0x598   :  { %v2252_v7 = vpop.f32.mrb[11].mxu0 }
 0x599   :  { %v2423_v7 = vld [vmem:[%s3130_s12] sm:$0xff]  }
 0x59d   :  { %v523_v8 = vpop.f32.mrb[12].mxu0 }
 0x59e   :  { %529 = vst.msk [vmem:[#allocation2 + $0x8] sm:$0xff] %vm188_vm2, %v523_v8  ;;  %v2263_v9 = vpop.f32.mrb[13].mxu0  ;;  %v2424_v8 = vld [vmem:[%s3130_s12 + $0x8] sm:$0xff]  }
 0x59f   :  { %v526_v10 = vpop.f32.mrb[14].mxu0  ;;  %v2425_v9 = vld [vmem:[%s3130_s12 + $0x10] sm:$0xff]  }
 0x5a0   :  { %v2264_v11 = vpop.f32.mrb[15].mxu0  ;;  %v2426_v10 = vld [vmem:[%s3130_s12 + $0x18] sm:$0xff]  }
 0x5a1   :  { %v2081_v11 = vld [vmem:[%s3129_s11] ss:$0 sm:$0xff] }
 0x5c5   :  { %v634_v14 = vpop.f32.mrb[16].mxu0 }
 0x5c6   :  { %641 = vrot.lane.b32.xlu1 %v634_v14, %s2564_s29  ;;  %v2275_v16 = vpop.f32.mrb[17].mxu0 }
 0x5c7   :  { %v637_v17 = vpop.f32.mrb[18].mxu0 }
 0x5c8   :  { %v2276_v18 = vpop.f32.mrb[19].mxu0 }
 0x608   :  { %v410_v19 = vpop.permute.xlu0 %409 }
 0x609   :  { %413 = vst.msk [vmem:[#allocation2] sm:$0xff] %vm412_vm5, %v410_v19 }
 0x610   :  { %v645_v21 = vld [vmem:[#allocation2] sm:$0xff] }
 0x638   :  { %v642_v20 = vpop.permute.xlu1 %641 }
 0x639   :  { %644 = vst.msk [vmem:[#allocation2 + $0x8] sm:$0xff] %vm412_vm5, %v642_v20 }
 0x640   :  { %v646_v22 = vld [vmem:[#allocation2 + $0x8] sm:$0xff] }
 0x641   :  { %v651_v23 = vpack.c.bf16 %v646_v22, %v645_v21 }
 0x643   :  { %2282 = vmatmul.mubr.msk.bf16.vlgmr.msra.gmra.mrb[16].mxu1 %vm71_vm0, %v651_v23 }
 0x644   :  { %2301 = vmatprep.mubr.msk.bf16.mxu1 %vm2558_vm1, %v2557_v15  ;;  %2294 = vmatpush3.bf16.msra.mxu1 %v2423_v7 }
 0x645   :  { %2295 = vmatprep.subr.bf16.mxu1 %v2557_v15 }
 0x648   :  { %2296 = vmatpush3.bf16.msra.mxu1 %v2424_v8  ;;  %v929_v8 = vld [vmem:[%s3132_s14] sm:$0x3] }
 0x649   :  { %2297 = vmatprep.subr.bf16.mxu1 %v2557_v15 }
 0x64c   :  { %2298 = vmatpush3.bf16.msra.mxu1 %v2425_v9  ;;  %v959_v9 = vrot.slane %v929_v8, %v2838_v56 }
 0x64d   :  { %2299 = vmatprep.subr.bf16.mxu1 %v2557_v15 }
 0x650   :  { %2300 = vmatpush3.bf16.msra.mxu1 %v2426_v10 }
 0x651   :  { %2319 = vmatprep.subr.bf16.mxu1 %v2557_v15 }
 0x716   :  { %v708_v25 = vpop.f32.mrb[16].mxu1 }
 0x717   :  { %v709_v26 = vadd.f32 %v2077_v24, %v708_v25  ;;  %v2283_v27 = vpop.f32.mrb[17].mxu1 }
 0x718   :  { %v711_v28 = vpop.f32.mrb[18].mxu1 }
 0x719   :  { %v712_v29 = vadd.f32 %v2077_v24, %v711_v28  ;;  %v2284_v30 = vpop.f32.mrb[19].mxu1  ;;  %v715_v33 = vadd.f32 %v709_v26, %v2703_v31 }
 0x71b   :  { %v718_v34 = vsel %vm71_vm0, %v715_v33, 0.0  ;;  %v716_v35 = vadd.f32 %v712_v29, %v2705_v32  ;;  %v2421_v32 = vld [vmem:[%s3128_s10] sm:$0xff]  }
 0x71c   :  { %719 = vadd.xlane.f32.xlu0 %v718_v34  ;;  %2286 = vmatpush3.bf16.msra.mxu0 %v2421_v32 }
 0x71d   :  { %v721_v36 = vsel %vm71_vm0, %v716_v35, 0.0  ;;  %2287 = vmatprep.subr.bf16.mxu0 %v2557_v15 }
 0x71e   :  { %722 = vadd.xlane.f32.xlu1 %v721_v36 }
 0x720   :  { %2288 = vmatpush3.bf16.msra.mxu0 %v2422_v47 }
 0x721   :  { %2305 = vmatprep.subr.bf16.mxu0 %v2557_v15 }
 0x7a9   :  { %v720_v37 = vpop.xlane.xlu0 %719 }
 0x7aa   :  { %v724_v38 = vmul.f32 0.03125, %v720_v37 }
 0x7ab   :  { %v723_v40 = vpop.xlane.xlu1 %722 }
 0x7ac   :  { %v726_v41 = vsub.f32 %v715_v33, %v724_v38  ;;  %v725_v43 = vmul.f32 0.03125, %v723_v40 }
 0x7ae   :  { %v727_v44 = vsub.f32 %v716_v35, %v725_v43  ;;  %v728_v39 = vmul.f32 %v726_v41, %v726_v41 }
 0x7b0   :  { %v730_v45 = vsel %vm71_vm0, %v728_v39, 0.0  ;;  %v729_v46 = vmul.f32 %v727_v44, %v727_v44 }
 0x7b1   :  { %731 = vadd.xlane.f32.xlu0 %v730_v45 }
 0x7b2   :  { %v733_v31 = vsel %vm71_vm0, %v729_v46, 0.0 }
 0x7b5   :  { %734 = vadd.xlane.f32.xlu0 %v733_v31 }
 0x83e   :  { %v732_v48 = vpop.xlane.xlu0 %731 }
 0x83f   :  { %v736_v42 = vmul.f32 0.03125, %v732_v48 }
 0x841   :  { %v738_v49 = vadd.f32 1e-12, %v736_v42 }
 0x842   :  { %v735_v51 = vpop.xlane.xlu0 %734 }
 0x843   :  { %2461 = vrsqrt.f32 %v738_v49  ;;  %v737_v52 = vmul.f32 0.03125, %v735_v51 }
 0x845   :  { %v739_v54 = vadd.f32 1e-12, %v737_v52 }
 0x847   :  { %2463 = vrsqrt.f32 %v739_v54 }
 0x84d   :  { %v2462_v58 = vpop.eup %2461 }
 0x84e   :  { %v742_v60 = vmul.f32 %v2462_v58, %v726_v41  ;;  %v2085_v41 = vld [vmem:[%s3131_s13] ss:$0 sm:$0xff] }
 0x850   :  { %v748_v63 = vmul.f32 %v747_v59, %v742_v60 }
 0x851   :  { %v2464_v62 = vpop.eup %2463 }
 0x852   :  { %v743_v0 = vmul.f32 %v2464_v62, %v727_v44  ;;  %v754_v4 = vadd.f32 %v753_v1, %v748_v63  ;;  %v2427_v63 = vld [vmem:[%s3123_s5 + $0x10] sm:$0xff]  }
 0x854   :  { %v749_v3 = vmul.f32 %v747_v59, %v743_v0  ;;  %v2428_v0 = vld [vmem:[%s3123_s5 + $0x18] sm:$0xff]  }
 0x856   :  { %v755_v5 = vadd.f32 %v753_v1, %v749_v3 }
 0x858   :  { %v760_v6 = vpack.c.bf16 %v755_v5, %v754_v4 }
 0x85a   :  { %2290 = vmatmul.mubr.msk.bf16.vlgmr.msra.gmra.mrb[20].mxu0 %vm71_vm0, %v760_v6 }
 0x85b   :  { %2309 = vmatprep.mubr.msk.bf16.mxu0 %vm2558_vm1, %v2557_v15  ;;  %2306 = vmatpush3.bf16.msra.mxu0 %v2427_v63 }
 0x85c   :  { %2307 = vmatprep.subr.bf16.mxu0 %v2557_v15 }
 0x85f   :  { %2308 = vmatpush3.bf16.msra.mxu0 %v2428_v0 }
 0x860   :  { %2313 = vmatprep.subr.bf16.mxu0 %v2557_v15 }
 0x92d   :  { %v817_v12 = vpop.f32.mrb[20].mxu0 }
 0x92e   :  { %v818_v13 = vadd.f32 %v2081_v11, %v817_v12  ;;  %v2291_v14 = vpop.f32.mrb[21].mxu0 }
 0x92f   :  { %v820_v16 = vpop.f32.mrb[22].mxu0 }
 0x930   :  { %v824_v17 = vmul.f32 %v818_v13, %v818_v13  ;;  %v821_v18 = vadd.f32 %v2081_v11, %v820_v16  ;;  %v2292_v19 = vpop.f32.mrb[23].mxu0  ;;  %v965_v16 = vrot.slane %v929_v8, %v2844_v61 }
 0x932   :  { %v826_v20 = vmul.f32 %v824_v17, %v818_v13  ;;  %v825_v21 = vmul.f32 %v821_v18, %v821_v18 }
 0x934   :  { %v828_v22 = vmul.f32 0.044715, %v826_v20  ;;  %v827_v23 = vmul.f32 %v825_v21, %v821_v18  ;;  %v2096_v21 = vld [vmem:[%s3124_s6 + $0x1] ss:$0 sm:$0xff] }
 0x936   :  { %v830_v24 = vadd.f32 %v828_v22, %v818_v13  ;;  %v829_v25 = vmul.f32 0.044715, %v827_v23 }
 0x938   :  { %v832_v26 = vmul.f32 0.7978846, %v830_v24  ;;  %v831_v27 = vadd.f32 %v829_v25, %v821_v18 }
 0x93a   :  { %2465 = vtanh.f32 %v832_v26  ;;  %v833_v28 = vmul.f32 0.7978846, %v831_v27 }
 0x93c   :  { %2467 = vtanh.f32 %v833_v28 }
 0x944   :  { %v2466_v29 = vpop.eup %2465 }
 0x945   :  { %v836_v30 = vadd.f32 1.0, %v2466_v29 }
 0x946   :  { %v2468_v33 = vpop.eup %2467 }
 0x947   :  { %v838_v34 = vmul.f32 0.5, %v836_v30  ;;  %v837_v35 = vadd.f32 1.0, %v2468_v33 }
 0x949   :  { %v839_v36 = vmul.f32 0.5, %v837_v35  ;;  %v840_v37 = vmul.f32 %v838_v34, %v818_v13 }
 0x94b   :  { %v841_v38 = vmul.f32 %v839_v36, %v821_v18 }
 0x94d   :  { %v850_v40 = vpack.c.bf16 %v841_v38, %v840_v37 }
 0x94f   :  { %2302 = vmatmul.mubr.msk.bf16.vlgmr.msra.gmra.mrb[20].mxu1 %vm882_vm6, %v850_v40 }
 0x950   :  { %2321 = vmatprep.mubr.msk.bf16.mxu1 %vm2558_vm1, %v2557_v15 }
 0xa22   :  { %v920_v43 = vpop.f32.mrb[20].mxu1 }
 0xa23   :  { %v921_v44 = vadd.f32 %v2085_v41, %v920_v43  ;;  %v2303_v39 = vpop.f32.mrb[21].mxu1 }
 0xa24   :  { %v923_v45 = vpop.f32.mrb[22].mxu1 }
 0xa25   :  { %v924_v46 = vadd.f32 %v2085_v41, %v923_v45  ;;  %v2304_v31 = vpop.f32.mrb[23].mxu1  ;;  %v927_v32 = vadd.f32 %v921_v44, %v754_v4 }
 0xa27   :  { %v930_v47 = vsel %vm71_vm0, %v927_v32, 0.0  ;;  %v928_v48 = vadd.f32 %v924_v46, %v755_v5 }
 0xa28   :  { %931 = vadd.xlane.f32.xlu0 %v930_v47 }
 0xa29   :  { %v933_v42 = vsel %vm71_vm0, %v928_v48, 0.0 }
 0xa2a   :  { %934 = vadd.xlane.f32.xlu1 %v933_v42 }
 0xab5   :  { %v932_v49 = vpop.xlane.xlu0 %931 }
 0xab6   :  { %v936_v51 = vmul.f32 0.03125, %v932_v49 }
 0xab7   :  { %v935_v52 = vpop.xlane.xlu1 %934 }
 0xab8   :  { %v938_v54 = vsub.f32 %v927_v32, %v936_v51  ;;  %v937_v55 = vmul.f32 0.03125, %v935_v52 }
 0xaba   :  { %v939_v57 = vsub.f32 %v928_v48, %v937_v55  ;;  %v940_v58 = vmul.f32 %v938_v54, %v938_v54 }
 0xabc   :  { %v942_v59 = vsel %vm71_vm0, %v940_v58, 0.0  ;;  %v941_v60 = vmul.f32 %v939_v57, %v939_v57 }
 0xabd   :  { %943 = vadd.xlane.f32.xlu0 %v942_v59 }
 0xabe   :  { %v945_v62 = vsel %vm71_vm0, %v941_v60, 0.0 }
 0xabf   :  { %946 = vadd.xlane.f32.xlu1 %v945_v62 }
 0xb4a   :  { %v944_v1 = vpop.xlane.xlu0 %943 }
 0xb4b   :  { %v948_v3 = vmul.f32 0.03125, %v944_v1 }
 0xb4c   :  { %v947_v4 = vpop.xlane.xlu1 %946 }
 0xb4d   :  { %v950_v5 = vadd.f32 1e-12, %v948_v3  ;;  %v949_v6 = vmul.f32 0.03125, %v947_v4 }
 0xb4f   :  { %2469 = vrsqrt.f32 %v950_v5  ;;  %v951_v7 = vadd.f32 1e-12, %v949_v6 }
 0xb51   :  { %2471 = vrsqrt.f32 %v951_v7 }
 0xb59   :  { %v2470_v10 = vpop.eup %2469 }
 0xb5a   :  { %v954_v11 = vmul.f32 %v2470_v10, %v938_v54 }
 0xb5b   :  { %v2472_v12 = vpop.eup %2471 }
 0xb5c   :  { %v960_v13 = vmul.f32 %v959_v9, %v954_v11  ;;  %v955_v14 = vmul.f32 %v2472_v12, %v939_v57 }
 0xb5e   :  { %v961_v17 = vmul.f32 %v959_v9, %v955_v14  ;;  %v2892_v18 = vadd.f32 %v965_v16, %v960_v13 }
 0xb60   :  { %v2894_v19 = vadd.f32 %v965_v16, %v961_v17 }
 0xb62   :  { %v973_v20 = vpack.c.bf16 %v2894_v19, %v2892_v18 }
 0xb64   :  { %2310 = vmatmul.mubr.msk.bf16.vlgmr.msra.gmra.mrb[24].mxu0 %vm71_vm0, %v973_v20 }
 0xb65   :  { %2315 = vmatprep.mubr.msk.bf16.mxu0 %vm2558_vm1, %v2557_v15 }
 0xc37   :  { %v1031_v22 = vpop.f32.mrb[24].mxu0 }
 0xc38   :  { %v1032_v23 = vadd.f32 %v2096_v21, %v1031_v22  ;;  %v2311_v24 = vpop.f32.mrb[25].mxu0 }
 0xc39   :  { %v1034_v25 = vpop.f32.mrb[26].mxu0 }
 0xc3a   :  { %v2904_v26 = vpack.c.bf16 %v1032_v23, %v1032_v23  ;;  %v1035_v27 = vadd.f32 %v2096_v21, %v1034_v25  ;;  %v2312_v28 = vpop.f32.mrb[27].mxu0 }
 0xc3c   :  { %1156 = vrot.lane.b32.xlu1 %v2904_v26, %s2559_s22  ;;  %1045 = vrot.lane.b32.xlu0 %v2904_v26, %s2560_s23  ;;  %v2910_v29 = vpack.c.bf16 %v1035_v27, %v1035_v27 }
 0xc40   :  { %1154 = vrot.lane.b32.xlu1 %v2904_v26, %s2561_s24  ;;  %1387 = vrot.lane.b32.xlu0 %v2910_v29, %s2559_s22 }
 0xc44   :  { %1276 = vrot.lane.b32.xlu1 %v2910_v29, %s2560_s23 }
 0xc48   :  { %1385 = vrot.lane.b32.xlu1 %v2910_v29, %s2561_s24 }
 0xcae   :  { %v1046_v30 = vpop.permute.xlu0 %1045  ;;  %v1157_v34 = vpop.permute.xlu1 %1156 }
 0xcaf   :  { %v1051_v33 = vsel %vm188_vm2, %v1046_v30, 0  ;;  %v1162_v36 = vsel %vm188_vm2, %v1157_v34, 0 }
 0xcb0   :  { %2314 = vmatpush3.bf16.xpose.msra.mxu0 %v1051_v33 }
 0xcb1   :  { %2325 = vmatprep.subr.bf16.mxu0 %v2557_v15 }
 0xcb2   :  { %v1155_v35 = vpop.permute.xlu1 %1154  ;;  %v1388_v40 = vpop.permute.xlu0 %1387 }
 0xcb3   :  { %v1393_v41 = vsel %vm188_vm2, %v1388_v40, 0 }
 0xcb6   :  { %v1277_v37 = vpop.permute.xlu1 %1276 }
 0xcb7   :  { %2316 = vmatmul.mubr.msk.bf16.vlgmr.msra.gmra.mrb[28].mxu0 %vm188_vm2, %v2904_v26  ;;  %v1282_v38 = vsel %vm188_vm2, %v1277_v37, 0 }
 0xcb8   :  { %2326 = vmatpush3.bf16.xpose.msra.mxu0 %v1162_v36  ;;  %2327 = vmatprep.mubr.msk.bf16.mxu0 %vm2558_vm1, %v2557_v15 }
 0xcb9   :  { %2337 = vmatprep.subr.bf16.mxu0 %v2557_v15 }
 0xcba   :  { %v1386_v43 = vpop.permute.xlu1 %1385 }
 0xcbf   :  { %2328 = vmatmul.mubr.msk.bf16.vlgmr.msra.gmra.mrb[32].mxu0 %vm188_vm2, %v1155_v35 }
 0xcc0   :  { %2338 = vmatpush3.bf16.xpose.msra.mxu0 %v1282_v38  ;;  %2339 = vmatprep.mubr.msk.bf16.mxu0 %vm2558_vm1, %v2557_v15 }
 0xcc1   :  { %2349 = vmatprep.subr.bf16.mxu0 %v2557_v15 }
 0xcc7   :  { %2340 = vmatmul.mubr.msk.bf16.vlgmr.msra.gmra.mrb[36].mxu0 %vm188_vm2, %v2910_v29 }
 0xcc8   :  { %2350 = vmatpush3.bf16.xpose.msra.mxu0 %v1393_v41  ;;  %2351 = vmatprep.mubr.msk.bf16.mxu0 %vm2558_vm1, %v2557_v15 }
 0xcc9   :  { %2361 = vmatprep.subr.bf16.mxu0 %v2557_v15 }
 0xccf   :  { %2352 = vmatmul.mubr.msk.bf16.vlgmr.msra.gmra.mrb[40].mxu0 %vm188_vm2, %v1386_v43 }
 0xcd0   :  { %2365 = vmatprep.mubr.msk.bf16.mxu0 %vm2558_vm1, %v2557_v15 }
 0xd8a   :  { %v1087_v44 = vpop.f32.mrb[28].mxu0 }
 0xd8b   :  { %v1088_v39 = vadd.f32 %v2756_v53, %v1087_v44  ;;  %v2317_v45 = vpop.f32.mrb[29].mxu0 }
 0xd8c   :  { %v1090_v46 = vpop.f32.mrb[30].mxu0 }
 0xd8d   :  { %v2318_v31 = vpop.f32.mrb[31].mxu0  ;;  %v1093_v32 = vsel %vm235_vm3, %v1088_v39, -inf }
 0xd8e   :  { %1094 = vmax.xlane.f32.xlu0 %v1093_v32 }
 0xd92   :  { %v1198_v47 = vpop.f32.mrb[32].mxu0 }
 0xd93   :  { %v1199_v48 = vadd.f32 %v2756_v53, %v1198_v47  ;;  %v2329_v42 = vpop.f32.mrb[33].mxu0 }
 0xd94   :  { %v1201_v49 = vpop.f32.mrb[34].mxu0 }
 0xd95   :  { %v2330_v51 = vpop.f32.mrb[35].mxu0  ;;  %v1204_v52 = vsel %vm235_vm3, %v1199_v48, -inf }
 0xd96   :  { %1205 = vmax.xlane.f32.xlu1 %v1204_v52 }
 0xd9a   :  { %v1318_v54 = vpop.f32.mrb[36].mxu0 }
 0xd9b   :  { %v1319_v55 = vadd.f32 %v2765_v2, %v1318_v54  ;;  %v2341_v57 = vpop.f32.mrb[37].mxu0 }
 0xd9c   :  { %v1321_v58 = vpop.f32.mrb[38].mxu0 }
 0xd9d   :  { %v2342_v59 = vpop.f32.mrb[39].mxu0  ;;  %v1324_v60 = vsel %vm235_vm3, %v1319_v55, -inf }
 0xd9e   :  { %1325 = vmax.xlane.f32.xlu0 %v1324_v60 }
 0xda2   :  { %v1429_v62 = vpop.f32.mrb[40].mxu0 }
 0xda3   :  { %v1430_v63 = vadd.f32 %v2765_v2, %v1429_v62  ;;  %v2353_v0 = vpop.f32.mrb[41].mxu0 }
 0xda4   :  { %v1432_v53 = vpop.f32.mrb[42].mxu0 }
 0xda5   :  { %v2354_v1 = vpop.f32.mrb[43].mxu0  ;;  %v1435_v3 = vsel %vm235_vm3, %v1430_v63, -inf }
 0xda6   :  { %1436 = vmax.xlane.f32.xlu0 %v1435_v3  ;;  %v2429_v1 = vld [vmem:[%s3125_s7 + $0x10] sm:$0xff]   ;;  %v2430_v3 = vld [vmem:[%s3125_s7 + $0x18] sm:$0xff]  }
 0xda7   :  { %2362 = vmatpush3.bf16.msra.mxu0 %v2429_v1 }
 0xda8   :  { %2363 = vmatprep.subr.bf16.mxu0 %v2557_v15 }
 0xdab   :  { %2364 = vmatpush3.bf16.msra.mxu0 %v2430_v3 }
 0xdac   :  { %2377 = vmatprep.subr.bf16.mxu0 %v2557_v15 }
 0xe1b   :  { %v1095_v4 = vpop.xlane.xlu0 %1094 }
 0xe1c   :  { %v1096_v5 = vsub.f32 %v1088_v39, %v1095_v4 }
 0xe1e   :  { %v1097_v6 = vmul.f32 1.442695, %v1096_v5 }
 0xe20   :  { %2473 = vpow2.f32 %v1097_v6 }
 0xe23   :  { %v1206_v7 = vpop.xlane.xlu1 %1205 }
 0xe24   :  { %v1207_v8 = vsub.f32 %v1199_v48, %v1206_v7 }
 0xe26   :  { %v1208_v9 = vmul.f32 1.442695, %v1207_v8 }
 0xe28   :  { %2475 = vpow2.f32 %v1208_v9 }
 0xe2a   :  { %v2474_v10 = vpop.eup %2473 }
 0xe2b   :  { %v1326_v11 = vpop.xlane.xlu0 %1325  ;;  %v1099_v12 = vsel %vm235_vm3, %v2474_v10, 0.0 }
 0xe2c   :  { %v1327_v13 = vsub.f32 %v1319_v55, %v1326_v11  ;;  %1100 = vadd.xlane.f32.xlu0 %v1099_v12 }
 0xe2e   :  { %v1328_v2 = vmul.f32 1.442695, %v1327_v13  ;;  %v2115_v13 = vld [vmem:[%s3126_s8 + $0x1] ss:$0 sm:$0xff] }
 0xe30   :  { %2477 = vpow2.f32 %v1328_v2 }
 0xe32   :  { %v2476_v14 = vpop.eup %2475 }
 0xe33   :  { %v1210_v16 = vsel %vm235_vm3, %v2476_v14, 0.0  ;;  %v1437_v21 = vpop.xlane.xlu0 %1436 }
 0xe34   :  { %1211 = vadd.xlane.f32.xlu1 %v1210_v16  ;;  %v1438_v22 = vsub.f32 %v1430_v63, %v1437_v21 }
 0xe36   :  { %v1439_v23 = vmul.f32 1.442695, %v1438_v22 }
 0xe38   :  { %2479 = vpow2.f32 %v1439_v23 }
 0xe3a   :  { %v2478_v17 = vpop.eup %2477 }
 0xe3b   :  { %v1330_v20 = vsel %vm235_vm3, %v2478_v17, 0.0 }
 0xe3c   :  { %1331 = vadd.xlane.f32.xlu0 %v1330_v20 }
 0xe42   :  { %v2480_v24 = vpop.eup %2479 }
 0xe43   :  { %v1441_v25 = vsel %vm235_vm3, %v2480_v24, 0.0 }
 0xe45   :  { %1216 = vrot.lane.b32.xlu1 %v2904_v26, %s2562_s28 }
 0xe49   :  { %1336 = vrot.lane.b32.xlu1 %v2910_v29, %s2563_s4 }
 0xe52   :  { %1105 = vrot.lane.b32.xlu0 %v2904_v26, %s2563_s4 }
 0xe6d   :  { %1442 = vadd.xlane.f32.xlu1 %v1441_v25 }
 0xe7e   :  { %1447 = vrot.lane.b32.xlu1 %v2910_v29, %s2562_s28 }
 0xeb9   :  { %v1101_v27 = vpop.xlane.xlu0 %1100 }
 0xeba   :  { %2481 = vrcp.f32 %v1101_v27 }
 0xec1   :  { %v1212_v28 = vpop.xlane.xlu1 %1211 }
 0xec2   :  { %2483 = vrcp.f32 %v1212_v28 }
 0xec4   :  { %v2482_v30 = vpop.eup %2481 }
 0xec5   :  { %v1103_v34 = vmul.f32 %v2482_v30, %v2474_v10  ;;  %v1217_v36 = vpop.permute.xlu1 %1216 }
 0xec6   :  { %v1222_v40 = vsel %vm253_vm4, %v1217_v36, 0 }
 0xec7   :  { %v1104_v37 = vpack.c.bf16 %v1103_v34, %v1103_v34 }
 0xec9   :  { %v1332_v33 = vpop.xlane.xlu0 %1331  ;;  %v1337_v41 = vpop.permute.xlu1 %1336 }
 0xeca   :  { %2485 = vrcp.f32 %v1332_v33  ;;  %v1342_v39 = vsel %vm253_vm4, %v1337_v41, 0 }
 0xecc   :  { %v2484_v38 = vpop.eup %2483 }
 0xecd   :  { %v1106_v35 = vpop.permute.xlu0 %1105  ;;  %v1214_v29 = vmul.f32 %v2484_v38, %v2476_v14  ;;  %v2432_v38 = vld [vmem:[%s3128_s10 + $0x18] sm:$0xff]  }
 0xece   :  { %v1111_v26 = vsel %vm253_vm4, %v1106_v35, 0 }
 0xecf   :  { %2320 = vmatpush3.bf16.msra.mxu1 %v1111_v26  ;;  %v1215_v43 = vpack.c.bf16 %v1214_v29, %v1214_v29 }
 0xed0   :  { %2331 = vmatprep.subr.bf16.mxu1 %v2557_v15 }
 0xed2   :  { %2322 = vmatmul.mubr.msk.bf16.vlgmr.msra.gmra.mrb[24].mxu1 %vm235_vm3, %v1104_v37 }
 0xed3   :  { %2332 = vmatpush3.bf16.msra.mxu1 %v1222_v40  ;;  %2333 = vmatprep.mubr.msk.bf16.mxu1 %vm2558_vm1, %v2557_v15 }
 0xed4   :  { %2343 = vmatprep.subr.bf16.mxu1 %v2557_v15  ;;  %v2486_v44 = vpop.eup %2485 }
 0xed5   :  { %v1334_v45 = vmul.f32 %v2486_v44, %v2478_v17 }
 0xed7   :  { %v1335_v46 = vpack.c.bf16 %v1334_v45, %v1334_v45  ;;  %v2119_v45 = vld [vmem:[%s3127_s9 + $0x2] sm:$0x3] }
 0xeda   :  { %2334 = vmatmul.mubr.msk.bf16.vlgmr.msra.gmra.mrb[28].mxu1 %vm235_vm3, %v1215_v43 }
 0xedb   :  { %2344 = vmatpush3.bf16.msra.mxu1 %v1342_v39  ;;  %2345 = vmatprep.mubr.msk.bf16.mxu1 %vm2558_vm1, %v2557_v15 }
 0xedc   :  { %2355 = vmatprep.subr.bf16.mxu1 %v2557_v15 }
 0xee2   :  { %2346 = vmatmul.mubr.msk.bf16.vlgmr.msra.gmra.mrb[32].mxu1 %vm235_vm3, %v1335_v46 }
 0xee3   :  { %2357 = vmatprep.mubr.msk.bf16.mxu1 %vm2558_vm1, %v2557_v15 }
 0xefa   :  { %v1443_v31 = vpop.xlane.xlu1 %1442 }
 0xefb   :  { %2487 = vrcp.f32 %v1443_v31  ;;  %v1605_v31 = vrot.slane %v2119_v45, %v2838_v56 }
 0xefe   :  { %v1448_v32 = vpop.permute.xlu1 %1447 }
 0xeff   :  { %v1453_v47 = vsel %vm253_vm4, %v1448_v32, 0 }
 0xf00   :  { %2356 = vmatpush3.bf16.msra.mxu1 %v1453_v47 }
 0xf01   :  { %2369 = vmatprep.subr.bf16.mxu1 %v2557_v15 }
 0xf05   :  { %v2488_v48 = vpop.eup %2487 }
 0xf06   :  { %v1445_v42 = vmul.f32 %v2488_v48, %v2480_v24 }
 0xf08   :  { %v1446_v49 = vpack.c.bf16 %v1445_v42, %v1445_v42 }
 0xf0a   :  { %2358 = vmatmul.mubr.msk.bf16.vlgmr.msra.gmra.mrb[36].mxu1 %vm235_vm3, %v1446_v49  ;;  %v1611_v49 = vrot.slane %v2119_v45, %v2844_v61 }
 0xf0b   :  { %2373 = vmatprep.mubr.msk.bf16.mxu1 %vm2558_vm1, %v2557_v15 }
 0xfa5   :  { %v1147_v51 = vpop.f32.mrb[24].mxu1 }
 0xfa6   :  { %1153 = vst.msk [vmem:[#allocation2] sm:$0xff] %vm188_vm2, %v1147_v51  ;;  %v2323_v52 = vpop.f32.mrb[25].mxu1 }
 0xfa7   :  { %v1150_v54 = vpop.f32.mrb[26].mxu1 }
 0xfa8   :  { %v2324_v55 = vpop.f32.mrb[27].mxu1 }
 0xfad   :  { %v1258_v57 = vpop.f32.mrb[28].mxu1 }
 0xfae   :  { %1265 = vrot.lane.b32.xlu0 %v1258_v57, %s2564_s29  ;;  %v2335_v58 = vpop.f32.mrb[29].mxu1  ;;  %v2433_v57 = vld [vmem:[%s3130_s12 + $0x20] sm:$0xff]  }
 0xfaf   :  { %v1261_v59 = vpop.f32.mrb[30].mxu1  ;;  %v2434_v58 = vld [vmem:[%s3130_s12 + $0x28] sm:$0xff]  }
 0xfb0   :  { %v2336_v60 = vpop.f32.mrb[31].mxu1  ;;  %v2435_v59 = vld [vmem:[%s3130_s12 + $0x30] sm:$0xff]  }
 0xfb1   :  { %v2436_v60 = vld [vmem:[%s3130_s12 + $0x38] sm:$0xff]  }
 0xfb5   :  { %v1378_v62 = vpop.f32.mrb[32].mxu1 }
 0xfb6   :  { %1384 = vst.msk [vmem:[#allocation2 + $0x8] sm:$0xff] %vm188_vm2, %v1378_v62  ;;  %v2347_v63 = vpop.f32.mrb[33].mxu1  ;;  %v2125_v62 = vld [vmem:[%s3129_s11 + $0x1] ss:$0 sm:$0xff] }
 0xfb7   :  { %v1381_v0 = vpop.f32.mrb[34].mxu1 }
 0xfb8   :  { %v2348_v53 = vpop.f32.mrb[35].mxu1 }
 0xfdd   :  { %v1489_v4 = vpop.f32.mrb[36].mxu1 }
 0xfde   :  { %1496 = vrot.lane.b32.xlu1 %v1489_v4, %s2564_s29  ;;  %v2359_v5 = vpop.f32.mrb[37].mxu1 }
 0xfdf   :  { %v1492_v6 = vpop.f32.mrb[38].mxu1 }
 0xfe0   :  { %v2360_v7 = vpop.f32.mrb[39].mxu1 }
0x1020   :  { %v1266_v8 = vpop.permute.xlu0 %1265 }
0x1021   :  { %1268 = vst.msk [vmem:[#allocation2] sm:$0xff] %vm412_vm5, %v1266_v8 }
0x1028   :  { %v1500_v10 = vld [vmem:[#allocation2] sm:$0xff] }
0x1050   :  { %v1497_v9 = vpop.permute.xlu1 %1496 }
0x1051   :  { %1499 = vst.msk [vmem:[#allocation2 + $0x8] sm:$0xff] %vm412_vm5, %v1497_v9 }
0x1058   :  { %v1501_v11 = vld [vmem:[#allocation2 + $0x8] sm:$0xff] }
0x1059   :  { %v1507_v12 = vpack.c.bf16 %v1501_v11, %v1500_v10 }
0x105b   :  { %2366 = vmatmul.mubr.msk.bf16.vlgmr.msra.gmra.mrb[44].mxu0 %vm71_vm0, %v1507_v12 }
0x105c   :  { %2385 = vmatprep.mubr.msk.bf16.mxu0 %vm2558_vm1, %v2557_v15  ;;  %2378 = vmatpush3.bf16.msra.mxu0 %v2433_v57 }
0x105d   :  { %2379 = vmatprep.subr.bf16.mxu0 %v2557_v15 }
0x1060   :  { %2380 = vmatpush3.bf16.msra.mxu0 %v2434_v58 }
0x1061   :  { %2381 = vmatprep.subr.bf16.mxu0 %v2557_v15 }
0x1064   :  { %2382 = vmatpush3.bf16.msra.mxu0 %v2435_v59 }
0x1065   :  { %2383 = vmatprep.subr.bf16.mxu0 %v2557_v15 }
0x1068   :  { %2384 = vmatpush3.bf16.msra.mxu0 %v2436_v60 }
0x112e   :  { %v1565_v2 = vpop.f32.mrb[44].mxu0 }
0x112f   :  { %v1566_v14 = vadd.f32 %v2115_v13, %v1565_v2  ;;  %v2367_v16 = vpop.f32.mrb[45].mxu0 }
0x1130   :  { %v1568_v17 = vpop.f32.mrb[46].mxu0 }
0x1131   :  { %v1569_v20 = vadd.f32 %v2115_v13, %v1568_v17  ;;  %v2368_v21 = vpop.f32.mrb[47].mxu0  ;;  %v1572_v22 = vadd.f32 %v1566_v14, %v2892_v18 }
0x1133   :  { %v1576_v23 = vsel %vm71_vm0, %v1572_v22, 0.0  ;;  %v1573_v24 = vadd.f32 %v1569_v20, %v2894_v19  ;;  %v2431_v19 = vld [vmem:[%s3128_s10 + $0x10] sm:$0xff]   ;;  %s3150_s10 = sld [smem:[#allocation11_spill]] }
0x1134   :  { %1577 = vadd.xlane.f32.xlu0 %v1576_v23  ;;  %2370 = vmatpush3.bf16.msra.mxu1 %v2431_v19 }
0x1135   :  { %v1579_v25 = vsel %vm71_vm0, %v1573_v24, 0.0  ;;  %2371 = vmatprep.subr.bf16.mxu1 %v2557_v15 }
0x1136   :  { %1580 = vadd.xlane.f32.xlu1 %v1579_v25 }
0x1138   :  { %2372 = vmatpush3.bf16.msra.mxu1 %v2432_v38 }
0x1139   :  { %2389 = vmatprep.subr.bf16.mxu1 %v2557_v15 }
0x11c1   :  { %v1578_v27 = vpop.xlane.xlu0 %1577 }
0x11c2   :  { %v1582_v28 = vmul.f32 0.03125, %v1578_v27  ;;  %v2138_v27 = vld [vmem:[%s3131_s13 + $0x1] ss:$0 sm:$0xff] }
0x11c3   :  { %v1581_v30 = vpop.xlane.xlu1 %1580 }
0x11c4   :  { %v1584_v33 = vsub.f32 %v1572_v22, %v1582_v28  ;;  %v1583_v34 = vmul.f32 0.03125, %v1581_v30 }
0x11c6   :  { %v1585_v35 = vsub.f32 %v1573_v24, %v1583_v34  ;;  %v1586_v26 = vmul.f32 %v1584_v33, %v1584_v33 }
0x11c8   :  { %v1588_v36 = vsel %vm71_vm0, %v1586_v26, 0.0  ;;  %v1587_v37 = vmul.f32 %v1585_v35, %v1585_v35 }
0x11c9   :  { %1589 = vadd.xlane.f32.xlu0 %v1588_v36 }
0x11ca   :  { %v1591_v18 = vsel %vm71_vm0, %v1587_v37, 0.0 }
0x11cd   :  { %1592 = vadd.xlane.f32.xlu0 %v1591_v18 }
0x1256   :  { %v1590_v40 = vpop.xlane.xlu0 %1589 }
0x1257   :  { %v1594_v29 = vmul.f32 0.03125, %v1590_v40 }
0x1259   :  { %v1596_v41 = vadd.f32 1e-12, %v1594_v29 }
0x125a   :  { %v1593_v43 = vpop.xlane.xlu0 %1592 }
0x125b   :  { %2489 = vrsqrt.f32 %v1596_v41  ;;  %v1595_v44 = vmul.f32 0.03125, %v1593_v43 }
0x125d   :  { %v1597_v39 = vadd.f32 1e-12, %v1595_v44 }
0x125f   :  { %2491 = vrsqrt.f32 %v1597_v39 }
0x1265   :  { %v2490_v46 = vpop.eup %2489 }
0x1266   :  { %v1600_v32 = vmul.f32 %v2490_v46, %v1584_v33 }
0x1268   :  { %v1606_v48 = vmul.f32 %v1605_v31, %v1600_v32  ;;  %v2437_v32 = vld [vmem:[%s3133_s15] sm:$0xff]  }
0x1269   :  { %v2492_v47 = vpop.eup %2491 }
0x126a   :  { %v1601_v42 = vmul.f32 %v2492_v47, %v1585_v35  ;;  %v1612_v52 = vadd.f32 %v1611_v49, %v1606_v48  ;;  %v2438_v47 = vld [vmem:[%s3133_s15 + $0x8] sm:$0xff]  }
0x126c   :  { %v1607_v51 = vmul.f32 %v1605_v31, %v1601_v42 }
0x126e   :  { %v1613_v54 = vadd.f32 %v1611_v49, %v1607_v51 }
0x1270   :  { %v1619_v55 = vpack.c.bf16 %v1613_v54, %v1612_v52 }
0x1272   :  { %2374 = vmatmul.mubr.msk.bf16.vlgmr.msra.gmra.mrb[40].mxu1 %vm71_vm0, %v1619_v55  ;;  %v2144_v55 = vld [vmem:[%s3132_s14 + $0x2] sm:$0x3] }
0x1273   :  { %2393 = vmatprep.mubr.msk.bf16.mxu1 %vm2558_vm1, %v2557_v15  ;;  %2390 = vmatpush3.bf16.msra.mxu1 %v2437_v32  ;;  %v1821_v58 = vrot.slane %v2144_v55, %v2838_v56  ;;  %v2439_v56 = vld [vmem:[%s3135_s17] sm:$0xff]  }
0x1274   :  { %2391 = vmatprep.subr.bf16.mxu1 %v2557_v15 }
0x1277   :  { %2392 = vmatpush3.bf16.msra.mxu1 %v2438_v47 }
0x1278   :  { %2397 = vmatprep.subr.bf16.mxu1 %v2557_v15 }
0x1345   :  { %v1677_v63 = vpop.f32.mrb[40].mxu1 }
0x1346   :  { %v1678_v0 = vadd.f32 %v2125_v62, %v1677_v63  ;;  %v2375_v53 = vpop.f32.mrb[41].mxu1  ;;  %v1827_v63 = vrot.slane %v2144_v55, %v2844_v61  ;;  %v2440_v61 = vld [vmem:[%s3135_s17 + $0x8] sm:$0xff]  }
0x1347   :  { %v1680_v1 = vpop.f32.mrb[42].mxu1 }
0x1348   :  { %v1684_v3 = vmul.f32 %v1678_v0, %v1678_v0  ;;  %v1681_v4 = vadd.f32 %v2125_v62, %v1680_v1  ;;  %v2376_v5 = vpop.f32.mrb[43].mxu1 }
0x134a   :  { %v1686_v6 = vmul.f32 %v1684_v3, %v1678_v0  ;;  %v1685_v7 = vmul.f32 %v1681_v4, %v1681_v4 }
0x134c   :  { %v1688_v8 = vmul.f32 0.044715, %v1686_v6  ;;  %v1687_v9 = vmul.f32 %v1685_v7, %v1681_v4  ;;  %v2145_v7 = vld [vmem:[%s3134_s16] ss:$0 sm:$0xff] }
0x134e   :  { %v1690_v10 = vadd.f32 %v1688_v8, %v1678_v0  ;;  %v1689_v11 = vmul.f32 0.044715, %v1687_v9 }
0x1350   :  { %v1692_v12 = vmul.f32 0.7978846, %v1690_v10  ;;  %v1691_v13 = vadd.f32 %v1689_v11, %v1681_v4 }
0x1352   :  { %2493 = vtanh.f32 %v1692_v12  ;;  %v1693_v2 = vmul.f32 0.7978846, %v1691_v13 }
0x1354   :  { %2495 = vtanh.f32 %v1693_v2 }
0x135c   :  { %v2494_v14 = vpop.eup %2493 }
0x135d   :  { %v1696_v16 = vadd.f32 1.0, %v2494_v14  ;;  %v1972_v14 = vand.u32 127, %v744_v50  ;;  %v1975_v50 = vld [vmem:[%s3150_s10] sm:$0x3] }
0x135e   :  { %v2496_v17 = vpop.eup %2495 }
0x135f   :  { %v1698_v20 = vmul.f32 0.5, %v1696_v16  ;;  %v1697_v21 = vadd.f32 1.0, %v2496_v17  ;;  %v2149_v16 = vld [vmem:[%s3136_s18] ss:$0 sm:$0xff]  ;;  %vm1973_vm8 = vcmp.lt.s32.totalorder %v1972_v14, 2 }
0x1361   :  { %v1699_v22 = vmul.f32 0.5, %v1697_v21  ;;  %v1700_v23 = vmul.f32 %v1698_v20, %v1678_v0 }
0x1363   :  { %v1701_v24 = vmul.f32 %v1699_v22, %v1681_v4 }
0x1365   :  { %v1711_v25 = vpack.c.bf16 %v1701_v24, %v1700_v23 }
0x1367   :  { %2386 = vmatmul.mubr.msk.bf16.vlgmr.msra.gmra.mrb[48].mxu0 %vm882_vm6, %v1711_v25 }
0x143a   :  { %v1781_v28 = vpop.f32.mrb[48].mxu0 }
0x143b   :  { %v1782_v30 = vadd.f32 %v2138_v27, %v1781_v28  ;;  %v2387_v33 = vpop.f32.mrb[49].mxu0 }
0x143c   :  { %v1784_v34 = vpop.f32.mrb[50].mxu0 }
0x143d   :  { %v1785_v35 = vadd.f32 %v2138_v27, %v1784_v34  ;;  %v2388_v26 = vpop.f32.mrb[51].mxu0  ;;  %v1788_v36 = vadd.f32 %v1782_v30, %v1612_v52  ;;  %v2565_v27 = vmov 0  }
0x143e   :  { %2416 = vset.pattern.permute.xlu0 %v2565_v27 }
0x143f   :  { %v1792_v37 = vsel %vm71_vm0, %v1788_v36, 0.0  ;;  %v1789_v18 = vadd.f32 %v1785_v35, %v1613_v54 }
0x1440   :  { %1793 = vadd.xlane.f32.xlu1 %v1792_v37 }
0x1441   :  { %v1795_v19 = vsel %vm71_vm0, %v1789_v18, 0.0 }
0x1442   :  { %1796 = vadd.xlane.f32.xlu0 %v1795_v19 }
0x14cd   :  { %v1794_v38 = vpop.xlane.xlu1 %1793 }
0x14ce   :  { %v1798_v40 = vmul.f32 0.03125, %v1794_v38 }
0x14cf   :  { %v1797_v29 = vpop.xlane.xlu0 %1796 }
0x14d0   :  { %v1800_v41 = vsub.f32 %v1788_v36, %v1798_v40  ;;  %v1799_v43 = vmul.f32 0.03125, %v1797_v29  ;;  %v2154_v29 = vld [vmem:[%s3151_s26] ss:$0 sm:$0xff] }
0x14d2   :  { %v1801_v44 = vsub.f32 %v1789_v18, %v1799_v43  ;;  %v1802_v39 = vmul.f32 %v1800_v41, %v1800_v41 }
0x14d4   :  { %v1804_v45 = vsel %vm71_vm0, %v1802_v39, 0.0  ;;  %v1803_v46 = vmul.f32 %v1801_v44, %v1801_v44 }
0x14d5   :  { %1805 = vadd.xlane.f32.xlu1 %v1804_v45 }
0x14d6   :  { %v1807_v31 = vsel %vm71_vm0, %v1803_v46, 0.0 }
0x14d7   :  { %1808 = vadd.xlane.f32.xlu0 %v1807_v31 }
0x1562   :  { %v1806_v48 = vpop.xlane.xlu1 %1805 }
0x1563   :  { %v1810_v42 = vmul.f32 0.03125, %v1806_v48 }
0x1564   :  { %v1809_v49 = vpop.xlane.xlu0 %1808 }
0x1565   :  { %v1812_v51 = vadd.f32 1e-12, %v1810_v42  ;;  %v1811_v52 = vmul.f32 0.03125, %v1809_v49 }
0x1567   :  { %2497 = vrsqrt.f32 %v1812_v51  ;;  %v1813_v54 = vadd.f32 1e-12, %v1811_v52 }
0x1569   :  { %2499 = vrsqrt.f32 %v1813_v54 }
0x1571   :  { %v2498_v57 = vpop.eup %2497 }
0x1572   :  { %v1816_v59 = vmul.f32 %v2498_v57, %v1800_v41 }
0x1573   :  { %v2500_v60 = vpop.eup %2499 }
0x1574   :  { %v1817_v62 = vmul.f32 %v2500_v60, %v1801_v44  ;;  %v1822_v0 = vmul.f32 %v1821_v58, %v1816_v59 }
0x1576   :  { %v1823_v53 = vmul.f32 %v1821_v58, %v1817_v62  ;;  %v1828_v3 = vadd.f32 %v1827_v63, %v1822_v0 }
0x1578   :  { %v1829_v1 = vadd.f32 %v1827_v63, %v1823_v53 }
0x157a   :  { %v1831_v4 = vrot.slane %v1829_v1, 7 }
0x157c   :  { %v1834_v5 = vsel %vm1833_vm7, %v1828_v3, %v1831_v4 }
0x157d   :  { %v1839_v6 = vpack.c.bf16 %v1834_v5, %v1834_v5 }
0x157f   :  { %2394 = vmatmul.mubr.msk.bf16.vlgmr.msra.gmra.mrb[44].mxu1 %vm71_vm0, %v1839_v6 }
0x1580   :  { %2401 = vmatprep.mubr.msk.bf16.mxu1 %vm2558_vm1, %v2557_v15  ;;  %2398 = vmatpush3.bf16.msra.mxu1 %v2439_v56 }
0x1581   :  { %2399 = vmatprep.subr.bf16.mxu1 %v2557_v15 }
0x1584   :  { %2400 = vmatpush3.bf16.msra.mxu1 %v2440_v61 }
0x1652   :  { %v1896_v8 = vpop.f32.mrb[44].mxu1 }
0x1653   :  { %v1897_v9 = vadd.f32 %v2145_v7, %v1896_v8  ;;  %v2395_v10 = vpop.f32.mrb[45].mxu1 }
0x1654   :  { %v1899_v11 = vpop.f32.mrb[46].mxu1 }
0x1655   :  { %2501 = vtanh.f32 %v1897_v9  ;;  %v2396_v12 = vpop.f32.mrb[47].mxu1 }
0x165f   :  { %v2502_v13 = vpop.eup %2501 }
0x1660   :  { %v1907_v2 = vpack.c.bf16 %v2502_v13, %v2502_v13 }
0x1662   :  { %2402 = vmatmul.mubr.msk.bf16.vlgmr.msra.gmra.mrb[48].mxu1 %vm71_vm0, %v1907_v2 }
0x1735   :  { %v1964_v17 = vpop.f32.mrb[48].mxu1 }
0x1736   :  { %v1965_v20 = vadd.f32 %v2149_v16, %v1964_v17  ;;  %v2403_v21 = vpop.f32.mrb[49].mxu1 }
0x1737   :  { %v1967_v22 = vpop.f32.mrb[50].mxu1 }
0x1738   :  { %v1974_v23 = vsel %vm1973_vm8, %v1965_v20, -1e+09  ;;  %1970 = vst [vmem:[#allocation3] sm:$0x3] %v1965_v20  ;;  %v2404_v24 = vpop.f32.mrb[51].mxu1 }
0x1739   :  { %v1983_v25 = vsel %vm1982_vm9, %v1974_v23, -inf }
0x173a   :  { %1984 = vmax.xlane.f32.xlu0 %v1983_v25 }
0x1750   :  { %1977 = vperm.xlu0 %2416, %v1975_v50  }
0x17c7   :  { %v1985_v28 = vpop.xlane.xlu0 %1984 }
0x17c8   :  { %v1986_v30 = vsub.f32 %v1974_v23, %v1985_v28 }
0x17ca   :  { %v1987_v33 = vmul.f32 1.442695, %v1986_v30 }
0x17cc   :  { %2503 = vpow2.f32 %v1987_v33 }
0x17cf   :  { %v1978_v36 = vpop.permute.xlu0 %1977 }
0x17d0   :  { %vm1979_vm10 = vcmp.eq.s32.totalorder %v1972_v14, %v1978_v36 }
0x17d1   :  { %v2153_v38 = vsel %vm1979_vm10, 1.0, %v2557_v15 }
0x17d2   :  { %v2008_v44 = vmul.f32 %v2154_v29, %v2153_v38 }
0x17d4   :  { %v2009_v39 = vsel %vm1982_vm9, %v2008_v44, 0.0 }
0x17d6   :  { %v2504_v34 = vpop.eup %2503 }
0x17d7   :  { %v1989_v35 = vsel %vm1982_vm9, %v2504_v34, 0.0 }
0x17d8   :  { %1990 = vadd.xlane.f32.xlu1 %v1989_v35 }
0x1865   :  { %v1991_v26 = vpop.xlane.xlu1 %1990 }
0x1866   :  { %2505 = vlog2.f32 %v1991_v26 }
0x1870   :  { %v2506_v37 = vpop.eup %2505 }
0x1871   :  { %v1993_v18 = vmul.f32 0.6931472, %v2506_v37 }
0x1873   :  { %v1994_v19 = vadd.f32 %v1993_v18, %v1985_v28 }
0x1875   :  { %v1995_v40 = vsub.f32 %v1974_v23, %v1994_v19 }
0x1877   :  { %v1996_v41 = vmul.f32 %v2153_v38, %v1995_v40 }
0x1879   :  { %v1997_v43 = vsel %vm1982_vm9, %v1996_v41, 0.0 }
0x187a   :  { %1998 = vadd.xlane.f32.xlu1 %v1997_v43 }
0x187e   :  { %2010 = vadd.xlane.f32.xlu1 %v2009_v39 }
0x187f   :  { %2520 = shalt.err (!%p2517_p4)
}
0x1880   :  { %s2521_s1 = scalar_lea.hbm %s3137_s19, 32 }
0x1881   :  { %p2522_p5 = scmp.ne.s32.totalorder %s3137_s19, %s2521_s1  ;;  %p2525_p6 = scmp.lt.u32.totalorder %s2521_s1, %s3137_s19 }
0x1883   :  { %p2527_p7 = pnand %p2525_p6, %p2522_p5 }
0x1885   :  { %2530 = shalt.err (!%p2527_p7)
}
0x1886   :  { %2042 = dma.vmem_to_hbm [thread:$0]  %s2040_s30, 32, %s3137_s19, [#allocation4]   ;;  %vm2031_vm12 = vcmask 0  }
0x1887   :  { %s2567_s19 = smov [#allocation5]  }
0x1888   :  { %s2049_s24 = sshll.u32 %s2567_s19, 4  ;;  %s2050_s24 = int_to_ptr.vmem [resolvable:$true] %s2049_s24 }
0x1889   :  { %s2531_s7 = scalar_lea.vmem %s2050_s24, 16  ;;  %s2535_s28 = scalar_lea.vmem %s2050_s24, 32 }
0x188a   :  { %p2532_p8 = scmp.ne.s32.totalorder %s2050_s24, %s2531_s7  ;;  %p2536_p9 = scmp.lt.s32.totalorder %s2050_s24, %s2050_s24 }
0x188b   :  { %p2537_p10 = scmp.lt.s32.totalorder %s2535_s28, %s2531_s7 }
0x188d   :  { %p2538_p11 = por %p2537_p10, %p2536_p9 }
0x188f   :  { %p2539_p12 = pnand %p2538_p11, %p2532_p8 }
0x1907   :  { %v1999_v15 = vpop.xlane.xlu1 %1998 }
0x1908   :  { %v2000_v45 = vsub.f32 0.0, %v1999_v15 }
0x190b   :  { %v2011_v46 = vpop.xlane.xlu1 %2010 }
0x190c   :  { %v2012_v31 = vmul.f32 %v2011_v46, %v2000_v45  ;;  %v2020_v32 = vsel %vm1982_vm9, %v2011_v46, 0.0 }
0x190d   :  { %v2021_v47 = vrot.slane %v2020_v32, 4 }
0x190e   :  { %v2013_v48 = vsel %vm1982_vm9, %v2012_v31, 0.0 }
0x190f   :  { %v2022_v42 = vadd.f32 %v2021_v47, %v2020_v32  ;;  %v2014_v49 = vrot.slane %v2013_v48, 4 }
0x1911   :  { %v2023_v51 = vrot.slane %v2022_v42, 2  ;;  %v2015_v54 = vadd.f32 %v2014_v49, %v2013_v48 }
0x1913   :  { %v2024_v52 = vadd.f32 %v2023_v51, %v2022_v42  ;;  %v2016_v58 = vrot.slane %v2015_v54, 2 }
0x1915   :  { %v2025_v55 = vrot.slane %v2024_v52, 1  ;;  %v2017_v60 = vadd.f32 %v2016_v58, %v2015_v54 }
0x1917   :  { %v2026_v57 = vadd.f32 %v2025_v55, %v2024_v52  ;;  %v2018_v62 = vrot.slane %v2017_v60, 1 }
0x1919   :  { %vm2027_vm11 = vcmp.gt.f32.partialorder %v2026_v57, 0.0  ;;  %v2019_v63 = vadd.f32 %v2018_v62, %v2017_v60 }
0x191a   :  { %v2028_v59 = vsel %vm2027_vm11, %v2026_v57, 1.0 }
0x191b   :  { %2507 = vrcp.f32 %v2028_v59 }
0x1925   :  { %v2508_v0 = vpop.eup %2507 }
0x1926   :  { %v2030_v53 = vmul.f32 %v2508_v0, %v2019_v63 }
0x1928   :  { %2032 = vst.msk [vmem:[#allocation5] sm:$0x1] %vm2031_vm12, %v2030_v53 }
0x1929   :  { %2542 = shalt.err (!%p2539_p12)
}
0x192a   :  { %s2543_s8 = scalar_lea.hbm %s3138_s20, 16 }
0x192b   :  { %p2544_p13 = scmp.ne.s32.totalorder %s3138_s20, %s2543_s8  ;;  %p2547_p0 = scmp.lt.u32.totalorder %s2543_s8, %s3138_s20 }
0x192d   :  { %p2549_p1 = pnand %p2547_p0, %p2544_p13 }
0x192f   :  { %2552 = shalt.err (!%p2549_p1)
}
0x1930   :  { %2052 = dma.vmem_to_hbm [thread:$0]  %s2050_s24, 16, %s3138_s20, [#allocation6]  }
0x1931   :  { %2553 = dma.done.wait [#allocation4], 32  }
0x1932   :  { %2554 = vsyncadd [#allocation4], 4294967264 }
0x1933   :  { %2555 = dma.done.wait [#allocation6], 16  }
0x1934   :  { %2556 = vsyncadd [#allocation6], 4294967280 }
0x1935   :  { %2059 = vsyncpa [#allocation4], 1 }
0x1936   :  { %2060 = vsyncpa [#allocation6], 1 }

</bundles_post_ra>
